<compile_context>
chip_gen: v5e
topology: v5e:2x2
jax: 0.10.0
libtpu: 0.0.40
codegen_flags: <defaults>
</compile_context>

<pallas_src>
import jax
import jax.numpy as jnp
from jax.experimental import pallas as pl
from jax.experimental.pallas import tpu as pltpu

# ----------------------------- configuration --------------------------------
D_MODEL = 32
D_STATE = 16
D_CONV = 4
EXPAND = 2
D_INNER = EXPAND * D_MODEL            # 64
DT_RANK = -(-D_MODEL // 16)           # ceil(d_model / 16) = 2
D_FFN = 4 * D_MODEL                   # 128
NUM_LAYERS = 2                        # >1 -> residual into the first LayerNorm
LN_EPS = 1e-12
SEQ_LEN = 8
BATCH = 2
# 1 = whole batch in one grid step (best on single-TC v5e/v6e); set 2 on v7x to
# shard the two "parallel" blocks across its two TensorCores.
NUM_BATCH_BLOCKS = 1


# ----------------------------- math helpers ---------------------------------
def _silu(x):
    return x * jax.nn.sigmoid(x)


def _softplus(x):
    return jnp.maximum(x, 0.0) + jnp.log1p(jnp.exp(-jnp.abs(x)))


def _gelu(x):
    # TODO(synk): PyTorch nn.GELU() defaults to exact erf; the tanh
    # approximation is used so the transcendental work goes to the EUP slot.
    c = 0.7978845608028654  # sqrt(2/pi)
    return 0.5 * x * (1.0 + jnp.tanh(c * (x + 0.044715 * x * x * x)))


def _layer_norm(x, gamma, beta):
    mu = jnp.mean(x, axis=-1, keepdims=True)
    var = jnp.mean((x - mu) ** 2, axis=-1, keepdims=True)
    return (x - mu) * jax.lax.rsqrt(var + LN_EPS) * gamma + beta


# -------------------------- batched forward (shared) -------------------------
# Used both by the Pallas kernel (scan writes rows into a VMEM scratch) and by
# the pure-JAX reference (scan concatenates rows) — identical arithmetic.
def _forward_batched(u2, w_in, conv_w, conv_b, w_x, w_dt, b_dt, a_log_t,
                     d_param, w_out, ln1_g, ln1_b, w1, b1, w2, b2,
                     ln2_g, ln2_b, scan_fn, n_b, seq):
    # ---- Mamba: input projection -> (x, z) ----------------------------------
    xz = jnp.dot(u2, w_in, preferred_element_type=jnp.float32)    # (BL, 2*Di)
    x3 = xz[:, :D_INNER].reshape(n_b, seq, D_INNER)               # (B, L, Di)
    z = xz[:, D_INNER:]                                           # (BL, Di)

    # ---- causal depthwise Conv1d (padding=d_conv-1, truncated to seq) -------
    # single zero-pad + static slices (no per-tap concatenate)
    xpad = jnp.concatenate(
        [jnp.zeros((n_b, D_CONV - 1, D_INNER), xz.dtype), x3], axis=1)
    conv = jnp.broadcast_to(conv_b, (n_b, seq, D_INNER))
    for k in range(D_CONV):
        conv = conv + xpad[:, k:k + seq, :] * conv_w[k:k + 1, :]
    xc3 = _silu(conv)                                             # (B, L, Di)
    xc = xc3.reshape(n_b * seq, D_INNER)

    # ---- x_proj -> (dt, B, C); dt_proj + softplus ----------------------------
    x_dbl = jnp.dot(xc, w_x, preferred_element_type=jnp.float32)  # (BL, R+2N)
    dt_in = x_dbl[:, :DT_RANK]
    B3 = x_dbl[:, DT_RANK:DT_RANK + D_STATE].reshape(n_b, seq, D_STATE)
    C3 = x_dbl[:, DT_RANK + D_STATE:].reshape(n_b, seq, D_STATE)
    delta = _softplus(
        jnp.dot(dt_in, w_dt, preferred_element_type=jnp.float32) + b_dt)
    delta3 = delta.reshape(n_b, seq, D_INNER)                     # (B, L, Di)
    dxc3 = delta3 * xc3                                           # (B, L, Di)
    a_t = -jnp.exp(a_log_t)                                       # (N, Di)

    # ---- selective scan (sequential over seq; Di stays on the lane axis) ----
    y3 = scan_fn(delta3, dxc3, B3, C3, a_t)                       # (B, L, Di)
    y = y3.reshape(n_b * seq, D_INNER) + xc * d_param
    y = y * _silu(z)
    mamba_out = jnp.dot(y, w_out, preferred_element_type=jnp.float32)

    # ---- MambaLayer head (dropout is identity in eval mode) ------------------
    if NUM_LAYERS == 1:
        hidden = _layer_norm(mamba_out, ln1_g, ln1_b)
    else:
        hidden = _layer_norm(mamba_out + u2, ln1_g, ln1_b)
    ffn = _gelu(jnp.dot(hidden, w1, preferred_element_type=jnp.float32) + b1)
    ffn = jnp.dot(ffn, w2, preferred_element_type=jnp.float32) + b2
    return _layer_norm(ffn + hidden, ln2_g, ln2_b)


def _scan_reference(delta3, dxc3, B3, C3, a_t):
    n_b, seq, _ = delta3.shape
    h = jnp.zeros((n_b, D_STATE, D_INNER), jnp.float32)
    ys = []
    for t in range(seq):
        h = (jnp.exp(delta3[:, t, None, :] * a_t) * h
             + dxc3[:, t, None, :] * B3[:, t, :, None])
        ys.append(jnp.sum(h * C3[:, t, :, None], axis=1, keepdims=True))
    return jnp.concatenate(ys, axis=1)                            # (B, L, Di)


# ------------------------------- Pallas kernel -------------------------------
def mamba_layer_kernel(u_ref,
                       w_in_ref, conv_w_ref, conv_b_ref, w_x_ref, w_dt_ref,
                       b_dt_ref, a_log_t_ref, d_param_ref, w_out_ref,
                       ln1_g_ref, ln1_b_ref, w1_ref, b1_ref, w2_ref, b2_ref,
                       ln2_g_ref, ln2_b_ref,
                       out_ref, y_sc):
    n_b, seq, _ = y_sc.shape

    def scan_to_scratch(delta3, dxc3, B3, C3, a_t):
        # y rows written directly to the VMEM scratch (sublane row stores);
        # no lane concats / transposes in the recurrence.
        h = jnp.zeros((n_b, D_STATE, D_INNER), jnp.float32)
        # TODO(synk): for seq >> 8 switch this statically unrolled loop to a
        # lax.fori_loop over VMEM scratches to bound vreg live ranges.
        for t in range(seq):
            h = (jnp.exp(delta3[:, t, None, :] * a_t) * h
                 + dxc3[:, t, None, :] * B3[:, t, :, None])
            y_sc[:, t:t + 1, :] = jnp.sum(h * C3[:, t, :, None], axis=1,
                                          keepdims=True)
        return y_sc[...]

    res = _forward_batched(
        u_ref[...], w_in_ref[...], conv_w_ref[...], conv_b_ref[...],
        w_x_ref[...], w_dt_ref[...], b_dt_ref[...], a_log_t_ref[...],
        d_param_ref[...], w_out_ref[...],
        ln1_g_ref[...], ln1_b_ref[...], w1_ref[...], b1_ref[...],
        w2_ref[...], b2_ref[...], ln2_g_ref[...], ln2_b_ref[...],
        scan_to_scratch, n_b, seq)
    out_ref[...] = res.astype(out_ref.dtype)


def mamba_layer(u, params, num_blocks=NUM_BATCH_BLOCKS):
    B, L, D = u.shape
    assert B % num_blocks == 0
    tb = B // num_blocks                       # examples per grid step
    u2 = u.reshape(B * L, D)                   # fold batch into matmul rows

    weight_specs = [
        pl.BlockSpec(p.shape, lambda i, nd=p.ndim: (0,) * nd) for p in params
    ]
    out2 = pl.pallas_call(
        mamba_layer_kernel,
        out_shape=jax.ShapeDtypeStruct((B * L, D), jnp.float32),
        grid_spec=pltpu.PrefetchScalarGridSpec(
            num_scalar_prefetch=0,
            grid=(num_blocks,),
            in_specs=[pl.BlockSpec((tb * L, D), lambda i: (i, 0))] + weight_specs,
            out_specs=pl.BlockSpec((tb * L, D), lambda i: (i, 0)),
            scratch_shapes=[pltpu.VMEM((tb, L, D_INNER), jnp.float32)],
        ),
        compiler_params=pltpu.CompilerParams(
            dimension_semantics=("parallel",)),
    )(u2, *params)
    return out2.reshape(B, L, D)


def mamba_layer_reference(u, params):
    B, L, D = u.shape
    out = _forward_batched(u.reshape(B * L, D), *params,
                           scan_fn=_scan_reference, n_b=B, seq=L)
    return out.reshape(B, L, D)


# ------------------------- deterministic parameters --------------------------
def init_params(key):
    ks = jax.random.split(key, 11)
    s = 0.05
    f32 = jnp.float32
    w_in = jax.random.normal(ks[0], (D_MODEL, 2 * D_INNER), f32) * s
    conv_w = jax.random.normal(ks[1], (D_CONV, D_INNER), f32) * s
    conv_b = jax.random.normal(ks[2], (1, D_INNER), f32) * s
    w_x = jax.random.normal(ks[3], (D_INNER, DT_RANK + 2 * D_STATE), f32) * s
    w_dt = jax.random.normal(ks[4], (DT_RANK, D_INNER), f32) * s
    b_dt = jax.random.normal(ks[5], (1, D_INNER), f32) * s
    # A_log stored pre-transposed as (d_state, d_inner): keeps d_inner on the
    # lane axis during the scan (no in-kernel transpose).
    a_log_t = jnp.log(jnp.broadcast_to(
        jnp.arange(1, D_STATE + 1, dtype=f32)[:, None], (D_STATE, D_INNER)))
    d_param = jnp.ones((1, D_INNER), f32)
    w_out = jax.random.normal(ks[6], (D_INNER, D_MODEL), f32) * s
    ln1_g = jnp.ones((1, D_MODEL), f32)
    ln1_b = jnp.zeros((1, D_MODEL), f32)
    w1 = jax.random.normal(ks[7], (D_MODEL, D_FFN), f32) * s
    b1 = jax.random.normal(ks[8], (1, D_FFN), f32) * s
    w2 = jax.random.normal(ks[9], (D_FFN, D_MODEL), f32) * s
    b2 = jax.random.normal(ks[10], (1, D_MODEL), f32) * s
    ln2_g = jnp.ones((1, D_MODEL), f32)
    ln2_b = jnp.zeros((1, D_MODEL), f32)
    return (w_in, conv_w, conv_b, w_x, w_dt, b_dt, a_log_t, d_param, w_out,
            ln1_g, ln1_b, w1, b1, w2, b2, ln2_g, ln2_b)


if __name__ == "__main__":
    key = jax.random.PRNGKey(0)
    k_u, k_p = jax.random.split(key)
    u = jax.random.normal(k_u, (BATCH, SEQ_LEN, D_MODEL), jnp.float32)
    params = init_params(k_p)

    out = jax.block_until_ready(mamba_layer(u, params))

    ref = mamba_layer_reference(u, params)
    assert out.shape == (BATCH, SEQ_LEN, D_MODEL)
    assert bool(jnp.all(jnp.isfinite(out)))
    max_err = float(jnp.max(jnp.abs(out - ref)))
    assert bool(jnp.allclose(out, ref, rtol=2e-2, atol=2e-2)), max_err

    print("KERNEL_OK")
</pallas_src>

<mosaic_0001>
module attributes {stable_mosaic.version = 11 : i64} {
  func.func @mamba_layer_kernel(%arg0: i32, %arg1: memref<16x32xf32, #tpu.memory_space<vmem>>, %arg2: memref<32x128xf32, #tpu.memory_space<vmem>>, %arg3: memref<4x64xf32, #tpu.memory_space<vmem>>, %arg4: memref<1x64xf32, #tpu.memory_space<vmem>>, %arg5: memref<64x34xf32, #tpu.memory_space<vmem>>, %arg6: memref<2x64xf32, #tpu.memory_space<vmem>>, %arg7: memref<1x64xf32, #tpu.memory_space<vmem>>, %arg8: memref<16x64xf32, #tpu.memory_space<vmem>>, %arg9: memref<1x64xf32, #tpu.memory_space<vmem>>, %arg10: memref<64x32xf32, #tpu.memory_space<vmem>>, %arg11: memref<1x32xf32, #tpu.memory_space<vmem>>, %arg12: memref<1x32xf32, #tpu.memory_space<vmem>>, %arg13: memref<32x128xf32, #tpu.memory_space<vmem>>, %arg14: memref<1x128xf32, #tpu.memory_space<vmem>>, %arg15: memref<128x32xf32, #tpu.memory_space<vmem>>, %arg16: memref<1x32xf32, #tpu.memory_space<vmem>>, %arg17: memref<1x32xf32, #tpu.memory_space<vmem>>, %arg18: memref<1x32xf32, #tpu.memory_space<vmem>>, %arg19: memref<16x32xf32, #tpu.memory_space<vmem>>, %arg20: memref<2x8x64xf32, #tpu.memory_space<vmem>>) attributes {dimension_semantics = [#tpu.dimension_semantics<parallel>], iteration_bounds = array<i64: 1>, scalar_prefetch = 0 : i64, scratch_operands = 1 : i64, tpu.core_type = #tpu.core_type<tc>, window_params = [{transform_indices = @transform_0, window_bounds = array<i64: 16, 32>}, {pipeline_mode = #tpu.pipeline_mode<synchronous>, transform_indices = @transform_1, window_bounds = array<i64: 32, 128>}, {pipeline_mode = #tpu.pipeline_mode<synchronous>, transform_indices = @transform_2, window_bounds = array<i64: 4, 64>}, {pipeline_mode = #tpu.pipeline_mode<synchronous>, transform_indices = @transform_3, window_bounds = array<i64: 1, 64>}, {pipeline_mode = #tpu.pipeline_mode<synchronous>, transform_indices = @transform_4, window_bounds = array<i64: 64, 34>}, {pipeline_mode = #tpu.pipeline_mode<synchronous>, transform_indices = @transform_5, window_bounds = array<i64: 2, 64>}, {pipeline_mode = #tpu.pipeline_mode<synchronous>, transform_indices = @transform_6, window_bounds = array<i64: 1, 64>}, {pipeline_mode = #tpu.pipeline_mode<synchronous>, transform_indices = @transform_7, window_bounds = array<i64: 16, 64>}, {pipeline_mode = #tpu.pipeline_mode<synchronous>, transform_indices = @transform_8, window_bounds = array<i64: 1, 64>}, {pipeline_mode = #tpu.pipeline_mode<synchronous>, transform_indices = @transform_9, window_bounds = array<i64: 64, 32>}, {pipeline_mode = #tpu.pipeline_mode<synchronous>, transform_indices = @transform_10, window_bounds = array<i64: 1, 32>}, {pipeline_mode = #tpu.pipeline_mode<synchronous>, transform_indices = @transform_11, window_bounds = array<i64: 1, 32>}, {pipeline_mode = #tpu.pipeline_mode<synchronous>, transform_indices = @transform_12, window_bounds = array<i64: 32, 128>}, {pipeline_mode = #tpu.pipeline_mode<synchronous>, transform_indices = @transform_13, window_bounds = array<i64: 1, 128>}, {pipeline_mode = #tpu.pipeline_mode<synchronous>, transform_indices = @transform_14, window_bounds = array<i64: 128, 32>}, {pipeline_mode = #tpu.pipeline_mode<synchronous>, transform_indices = @transform_15, window_bounds = array<i64: 1, 32>}, {pipeline_mode = #tpu.pipeline_mode<synchronous>, transform_indices = @transform_16, window_bounds = array<i64: 1, 32>}, {pipeline_mode = #tpu.pipeline_mode<synchronous>, transform_indices = @transform_17, window_bounds = array<i64: 1, 32>}, {transform_indices = @transform_18, window_bounds = array<i64: 16, 32>}]} {
    %c0 = arith.constant 0 : index
    %c0_0 = arith.constant 0 : index
    %0 = vector.load %arg1[%c0, %c0_0] : memref<16x32xf32, #tpu.memory_space<vmem>>, vector<16x32xf32>
    %c0_1 = arith.constant 0 : index
    %c0_2 = arith.constant 0 : index
    %1 = vector.load %arg2[%c0_1, %c0_2] : memref<32x128xf32, #tpu.memory_space<vmem>>, vector<32x128xf32>
    %c0_3 = arith.constant 0 : index
    %c0_4 = arith.constant 0 : index
    %2 = vector.load %arg3[%c0_3, %c0_4] : memref<4x64xf32, #tpu.memory_space<vmem>>, vector<4x64xf32>
    %c0_5 = arith.constant 0 : index
    %c0_6 = arith.constant 0 : index
    %3 = vector.load %arg4[%c0_5, %c0_6] : memref<1x64xf32, #tpu.memory_space<vmem>>, vector<1x64xf32>
    %c0_7 = arith.constant 0 : index
    %c0_8 = arith.constant 0 : index
    %4 = vector.load %arg5[%c0_7, %c0_8] : memref<64x34xf32, #tpu.memory_space<vmem>>, vector<64x34xf32>
    %c0_9 = arith.constant 0 : index
    %c0_10 = arith.constant 0 : index
    %5 = vector.load %arg6[%c0_9, %c0_10] : memref<2x64xf32, #tpu.memory_space<vmem>>, vector<2x64xf32>
    %c0_11 = arith.constant 0 : index
    %c0_12 = arith.constant 0 : index
    %6 = vector.load %arg7[%c0_11, %c0_12] : memref<1x64xf32, #tpu.memory_space<vmem>>, vector<1x64xf32>
    %c0_13 = arith.constant 0 : index
    %c0_14 = arith.constant 0 : index
    %7 = vector.load %arg8[%c0_13, %c0_14] : memref<16x64xf32, #tpu.memory_space<vmem>>, vector<16x64xf32>
    %c0_15 = arith.constant 0 : index
    %c0_16 = arith.constant 0 : index
    %8 = vector.load %arg9[%c0_15, %c0_16] : memref<1x64xf32, #tpu.memory_space<vmem>>, vector<1x64xf32>
    %c0_17 = arith.constant 0 : index
    %c0_18 = arith.constant 0 : index
    %9 = vector.load %arg10[%c0_17, %c0_18] : memref<64x32xf32, #tpu.memory_space<vmem>>, vector<64x32xf32>
    %c0_19 = arith.constant 0 : index
    %c0_20 = arith.constant 0 : index
    %10 = vector.load %arg11[%c0_19, %c0_20] : memref<1x32xf32, #tpu.memory_space<vmem>>, vector<1x32xf32>
    %c0_21 = arith.constant 0 : index
    %c0_22 = arith.constant 0 : index
    %11 = vector.load %arg12[%c0_21, %c0_22] : memref<1x32xf32, #tpu.memory_space<vmem>>, vector<1x32xf32>
    %c0_23 = arith.constant 0 : index
    %c0_24 = arith.constant 0 : index
    %12 = vector.load %arg13[%c0_23, %c0_24] : memref<32x128xf32, #tpu.memory_space<vmem>>, vector<32x128xf32>
    %c0_25 = arith.constant 0 : index
    %c0_26 = arith.constant 0 : index
    %13 = vector.load %arg14[%c0_25, %c0_26] : memref<1x128xf32, #tpu.memory_space<vmem>>, vector<1x128xf32>
    %c0_27 = arith.constant 0 : index
    %c0_28 = arith.constant 0 : index
    %14 = vector.load %arg15[%c0_27, %c0_28] : memref<128x32xf32, #tpu.memory_space<vmem>>, vector<128x32xf32>
    %c0_29 = arith.constant 0 : index
    %c0_30 = arith.constant 0 : index
    %15 = vector.load %arg16[%c0_29, %c0_30] : memref<1x32xf32, #tpu.memory_space<vmem>>, vector<1x32xf32>
    %c0_31 = arith.constant 0 : index
    %c0_32 = arith.constant 0 : index
    %16 = vector.load %arg17[%c0_31, %c0_32] : memref<1x32xf32, #tpu.memory_space<vmem>>, vector<1x32xf32>
    %c0_33 = arith.constant 0 : index
    %c0_34 = arith.constant 0 : index
    %17 = vector.load %arg18[%c0_33, %c0_34] : memref<1x32xf32, #tpu.memory_space<vmem>>, vector<1x32xf32>
    %cst = arith.constant dense<0.000000e+00> : vector<16x128xf32>
    %18 = tpu.matmul %0, %1, %cst {dimension_numbers = #tpu.dot_dimension_numbers<[1], [0], [0], [1], [0, 0, 1, 1], [], []>} : vector<16x32xf32>, vector<32x128xf32>, vector<16x128xf32> -> vector<16x128xf32>
    %19 = vector.extract_strided_slice %18 {offsets = [0, 0], sizes = [16, 64], strides = [1, 1]} : vector<16x128xf32> to vector<16x64xf32>
    %20 = vector.shape_cast %19 : vector<16x64xf32> to vector<2x8x64xf32>
    %21 = vector.extract_strided_slice %18 {offsets = [0, 64], sizes = [16, 64], strides = [1, 1]} : vector<16x128xf32> to vector<16x64xf32>
    %cst_35 = arith.constant 0.000000e+00 : f32
    %22 = vector.broadcast %cst_35 : f32 to vector<2x3x64xf32>
    %23 = tpu.concatenate %22, %20 in 1 : vector<2x3x64xf32>, vector<2x8x64xf32> -> vector<2x11x64xf32>
    %24 = vector.shape_cast %3 : vector<1x64xf32> to vector<1x1x64xf32>
    %25 = vector.broadcast %24 : vector<1x1x64xf32> to vector<2x8x64xf32>
    %26 = vector.extract_strided_slice %23 {offsets = [0, 0, 0], sizes = [2, 8, 64], strides = [1, 1, 1]} : vector<2x11x64xf32> to vector<2x8x64xf32>
    %27 = vector.extract_strided_slice %2 {offsets = [0, 0], sizes = [1, 64], strides = [1, 1]} : vector<4x64xf32> to vector<1x64xf32>
    %28 = vector.shape_cast %27 : vector<1x64xf32> to vector<1x1x64xf32>
    %29 = vector.broadcast %28 : vector<1x1x64xf32> to vector<2x8x64xf32>
    %30 = arith.mulf %26, %29 : vector<2x8x64xf32>
    %31 = arith.addf %25, %30 : vector<2x8x64xf32>
    %32 = vector.extract_strided_slice %23 {offsets = [0, 1, 0], sizes = [2, 8, 64], strides = [1, 1, 1]} : vector<2x11x64xf32> to vector<2x8x64xf32>
    %33 = vector.extract_strided_slice %2 {offsets = [1, 0], sizes = [1, 64], strides = [1, 1]} : vector<4x64xf32> to vector<1x64xf32>
    %34 = vector.shape_cast %33 : vector<1x64xf32> to vector<1x1x64xf32>
    %35 = vector.broadcast %34 : vector<1x1x64xf32> to vector<2x8x64xf32>
    %36 = arith.mulf %32, %35 : vector<2x8x64xf32>
    %37 = arith.addf %31, %36 : vector<2x8x64xf32>
    %38 = vector.extract_strided_slice %23 {offsets = [0, 2, 0], sizes = [2, 8, 64], strides = [1, 1, 1]} : vector<2x11x64xf32> to vector<2x8x64xf32>
    %39 = vector.extract_strided_slice %2 {offsets = [2, 0], sizes = [1, 64], strides = [1, 1]} : vector<4x64xf32> to vector<1x64xf32>
    %40 = vector.shape_cast %39 : vector<1x64xf32> to vector<1x1x64xf32>
    %41 = vector.broadcast %40 : vector<1x1x64xf32> to vector<2x8x64xf32>
    %42 = arith.mulf %38, %41 : vector<2x8x64xf32>
    %43 = arith.addf %37, %42 : vector<2x8x64xf32>
    %44 = vector.extract_strided_slice %23 {offsets = [0, 3, 0], sizes = [2, 8, 64], strides = [1, 1, 1]} : vector<2x11x64xf32> to vector<2x8x64xf32>
    %45 = vector.extract_strided_slice %2 {offsets = [3, 0], sizes = [1, 64], strides = [1, 1]} : vector<4x64xf32> to vector<1x64xf32>
    %46 = vector.shape_cast %45 : vector<1x64xf32> to vector<1x1x64xf32>
    %47 = vector.broadcast %46 : vector<1x1x64xf32> to vector<2x8x64xf32>
    %48 = arith.mulf %44, %47 : vector<2x8x64xf32>
    %49 = arith.addf %43, %48 : vector<2x8x64xf32>
    %50 = arith.negf %49 : vector<2x8x64xf32>
    %51 = math.exp %50 : vector<2x8x64xf32>
    %cst_36 = arith.constant 1.000000e+00 : f32
    %52 = vector.broadcast %cst_36 : f32 to vector<2x8x64xf32>
    %53 = arith.addf %52, %51 : vector<2x8x64xf32>
    %54 = arith.divf %52, %53 : vector<2x8x64xf32>
    %55 = arith.mulf %49, %54 : vector<2x8x64xf32>
    %56 = vector.shape_cast %55 : vector<2x8x64xf32> to vector<16x64xf32>
    %cst_37 = arith.constant dense<0.000000e+00> : vector<16x34xf32>
    %57 = tpu.matmul %56, %4, %cst_37 {dimension_numbers = #tpu.dot_dimension_numbers<[1], [0], [0], [1], [0, 0, 1, 1], [], []>} : vector<16x64xf32>, vector<64x34xf32>, vector<16x34xf32> -> vector<16x34xf32>
    %58 = vector.extract_strided_slice %57 {offsets = [0, 0], sizes = [16, 2], strides = [1, 1]} : vector<16x34xf32> to vector<16x2xf32>
    %59 = vector.extract_strided_slice %57 {offsets = [0, 2], sizes = [16, 16], strides = [1, 1]} : vector<16x34xf32> to vector<16x16xf32>
    %60 = vector.shape_cast %59 : vector<16x16xf32> to vector<2x8x16xf32>
    %61 = vector.extract_strided_slice %57 {offsets = [0, 18], sizes = [16, 16], strides = [1, 1]} : vector<16x34xf32> to vector<16x16xf32>
    %62 = vector.shape_cast %61 : vector<16x16xf32> to vector<2x8x16xf32>
    %cst_38 = arith.constant dense<0.000000e+00> : vector<16x64xf32>
    %63 = tpu.matmul %58, %5, %cst_38 {dimension_numbers = #tpu.dot_dimension_numbers<[1], [0], [0], [1], [0, 0, 1, 1], [], []>} : vector<16x2xf32>, vector<2x64xf32>, vector<16x64xf32> -> vector<16x64xf32>
    %64 = vector.broadcast %6 : vector<1x64xf32> to vector<16x64xf32>
    %65 = arith.addf %63, %64 : vector<16x64xf32>
    %cst_39 = arith.constant 0.000000e+00 : f32
    %66 = vector.broadcast %cst_39 : f32 to vector<16x64xf32>
    %67 = arith.maximumf %65, %66 : vector<16x64xf32>
    %68 = math.absf %65 : vector<16x64xf32>
    %cst_40 = arith.constant 0.000000e+00 : f32
    %69 = vector.broadcast %cst_40 : f32 to vector<16x64xf32>
    %70 = arith.subf %69, %68 : vector<16x64xf32>
    %71 = math.exp %70 : vector<16x64xf32>
    %72 = math.log1p %71 : vector<16x64xf32>
    %73 = arith.addf %67, %72 : vector<16x64xf32>
    %74 = vector.shape_cast %73 : vector<16x64xf32> to vector<2x8x64xf32>
    %75 = arith.mulf %74, %55 : vector<2x8x64xf32>
    %76 = math.exp %7 : vector<16x64xf32>
    %cst_41 = arith.constant 0.000000e+00 : f32
    %77 = vector.broadcast %cst_41 : f32 to vector<16x64xf32>
    %78 = arith.subf %77, %76 : vector<16x64xf32>
    %cst_42 = arith.constant 0.000000e+00 : f32
    %79 = vector.broadcast %cst_42 : f32 to vector<2x16x64xf32>
    %80 = vector.extract_strided_slice %74 {offsets = [0, 0, 0], sizes = [2, 1, 64], strides = [1, 1, 1]} : vector<2x8x64xf32> to vector<2x1x64xf32>
    %81 = vector.shape_cast %80 : vector<2x1x64xf32> to vector<2x64xf32>
    %82 = vector.shape_cast %81 : vector<2x64xf32> to vector<2x1x64xf32>
    %83 = vector.shape_cast %78 : vector<16x64xf32> to vector<1x16x64xf32>
    %84 = vector.broadcast %82 : vector<2x1x64xf32> to vector<2x16x64xf32>
    %85 = vector.broadcast %83 : vector<1x16x64xf32> to vector<2x16x64xf32>
    %86 = arith.mulf %84, %85 : vector<2x16x64xf32>
    %87 = math.exp %86 : vector<2x16x64xf32>
    %88 = arith.mulf %87, %79 : vector<2x16x64xf32>
    %89 = vector.extract_strided_slice %75 {offsets = [0, 0, 0], sizes = [2, 1, 64], strides = [1, 1, 1]} : vector<2x8x64xf32> to vector<2x1x64xf32>
    %90 = vector.shape_cast %89 : vector<2x1x64xf32> to vector<2x64xf32>
    %91 = vector.shape_cast %90 : vector<2x64xf32> to vector<2x1x64xf32>
    %92 = vector.extract_strided_slice %60 {offsets = [0, 0, 0], sizes = [2, 1, 16], strides = [1, 1, 1]} : vector<2x8x16xf32> to vector<2x1x16xf32>
    %93 = vector.shape_cast %92 : vector<2x1x16xf32> to vector<2x16xf32>
    %94 = vector.shape_cast %93 : vector<2x16xf32> to vector<2x16x1xf32>
    %95 = vector.broadcast %91 : vector<2x1x64xf32> to vector<2x16x64xf32>
    %96 = vector.broadcast %94 : vector<2x16x1xf32> to vector<2x16x64xf32>
    %97 = arith.mulf %95, %96 : vector<2x16x64xf32>
    %98 = arith.addf %88, %97 : vector<2x16x64xf32>
    %99 = vector.extract_strided_slice %62 {offsets = [0, 0, 0], sizes = [2, 1, 16], strides = [1, 1, 1]} : vector<2x8x16xf32> to vector<2x1x16xf32>
    %100 = vector.shape_cast %99 : vector<2x1x16xf32> to vector<2x16xf32>
    %101 = vector.shape_cast %100 : vector<2x16xf32> to vector<2x16x1xf32>
    %102 = vector.broadcast %101 : vector<2x16x1xf32> to vector<2x16x64xf32>
    %103 = arith.mulf %98, %102 : vector<2x16x64xf32>
    %cst_43 = arith.constant dense<0.000000e+00> : vector<2x64xf32>
    %104 = vector.multi_reduction <add>, %103, %cst_43 [1] : vector<2x16x64xf32> to vector<2x64xf32>
    %105 = vector.shape_cast %104 : vector<2x64xf32> to vector<2x1x64xf32>
    %c0_44 = arith.constant 0 : index
    %c0_45 = arith.constant 0 : index
    %c0_46 = arith.constant 0 : index
    %106 = vector.load %arg20[%c0_44, %c0_45, %c0_46] : memref<2x8x64xf32, #tpu.memory_space<vmem>>, vector<2x1x64xf32>
    tpu.vector_store %arg20[%c0_44, %c0_45, %c0_46], %105 {strides = array<i32>} : memref<2x8x64xf32, #tpu.memory_space<vmem>>, vector<2x1x64xf32>,
    %107 = vector.extract_strided_slice %74 {offsets = [0, 1, 0], sizes = [2, 1, 64], strides = [1, 1, 1]} : vector<2x8x64xf32> to vector<2x1x64xf32>
    %108 = vector.shape_cast %107 : vector<2x1x64xf32> to vector<2x64xf32>
    %109 = vector.shape_cast %108 : vector<2x64xf32> to vector<2x1x64xf32>
    %110 = vector.shape_cast %78 : vector<16x64xf32> to vector<1x16x64xf32>
    %111 = vector.broadcast %109 : vector<2x1x64xf32> to vector<2x16x64xf32>
    %112 = vector.broadcast %110 : vector<1x16x64xf32> to vector<2x16x64xf32>
    %113 = arith.mulf %111, %112 : vector<2x16x64xf32>
    %114 = math.exp %113 : vector<2x16x64xf32>
    %115 = arith.mulf %114, %98 : vector<2x16x64xf32>
    %116 = vector.extract_strided_slice %75 {offsets = [0, 1, 0], sizes = [2, 1, 64], strides = [1, 1, 1]} : vector<2x8x64xf32> to vector<2x1x64xf32>
    %117 = vector.shape_cast %116 : vector<2x1x64xf32> to vector<2x64xf32>
    %118 = vector.shape_cast %117 : vector<2x64xf32> to vector<2x1x64xf32>
    %119 = vector.extract_strided_slice %60 {offsets = [0, 1, 0], sizes = [2, 1, 16], strides = [1, 1, 1]} : vector<2x8x16xf32> to vector<2x1x16xf32>
    %120 = vector.shape_cast %119 : vector<2x1x16xf32> to vector<2x16xf32>
    %121 = vector.shape_cast %120 : vector<2x16xf32> to vector<2x16x1xf32>
    %122 = vector.broadcast %118 : vector<2x1x64xf32> to vector<2x16x64xf32>
    %123 = vector.broadcast %121 : vector<2x16x1xf32> to vector<2x16x64xf32>
    %124 = arith.mulf %122, %123 : vector<2x16x64xf32>
    %125 = arith.addf %115, %124 : vector<2x16x64xf32>
    %126 = vector.extract_strided_slice %62 {offsets = [0, 1, 0], sizes = [2, 1, 16], strides = [1, 1, 1]} : vector<2x8x16xf32> to vector<2x1x16xf32>
    %127 = vector.shape_cast %126 : vector<2x1x16xf32> to vector<2x16xf32>
    %128 = vector.shape_cast %127 : vector<2x16xf32> to vector<2x16x1xf32>
    %129 = vector.broadcast %128 : vector<2x16x1xf32> to vector<2x16x64xf32>
    %130 = arith.mulf %125, %129 : vector<2x16x64xf32>
    %cst_47 = arith.constant dense<0.000000e+00> : vector<2x64xf32>
    %131 = vector.multi_reduction <add>, %130, %cst_47 [1] : vector<2x16x64xf32> to vector<2x64xf32>
    %132 = vector.shape_cast %131 : vector<2x64xf32> to vector<2x1x64xf32>
    %c0_48 = arith.constant 0 : index
    %c1 = arith.constant 1 : index
    %c0_49 = arith.constant 0 : index
    %133 = vector.load %arg20[%c0_48, %c1, %c0_49] : memref<2x8x64xf32, #tpu.memory_space<vmem>>, vector<2x1x64xf32>
    tpu.vector_store %arg20[%c0_48, %c1, %c0_49], %132 {strides = array<i32>} : memref<2x8x64xf32, #tpu.memory_space<vmem>>, vector<2x1x64xf32>,
    %134 = vector.extract_strided_slice %74 {offsets = [0, 2, 0], sizes = [2, 1, 64], strides = [1, 1, 1]} : vector<2x8x64xf32> to vector<2x1x64xf32>
    %135 = vector.shape_cast %134 : vector<2x1x64xf32> to vector<2x64xf32>
    %136 = vector.shape_cast %135 : vector<2x64xf32> to vector<2x1x64xf32>
    %137 = vector.shape_cast %78 : vector<16x64xf32> to vector<1x16x64xf32>
    %138 = vector.broadcast %136 : vector<2x1x64xf32> to vector<2x16x64xf32>
    %139 = vector.broadcast %137 : vector<1x16x64xf32> to vector<2x16x64xf32>
    %140 = arith.mulf %138, %139 : vector<2x16x64xf32>
    %141 = math.exp %140 : vector<2x16x64xf32>
    %142 = arith.mulf %141, %125 : vector<2x16x64xf32>
    %143 = vector.extract_strided_slice %75 {offsets = [0, 2, 0], sizes = [2, 1, 64], strides = [1, 1, 1]} : vector<2x8x64xf32> to vector<2x1x64xf32>
    %144 = vector.shape_cast %143 : vector<2x1x64xf32> to vector<2x64xf32>
    %145 = vector.shape_cast %144 : vector<2x64xf32> to vector<2x1x64xf32>
    %146 = vector.extract_strided_slice %60 {offsets = [0, 2, 0], sizes = [2, 1, 16], strides = [1, 1, 1]} : vector<2x8x16xf32> to vector<2x1x16xf32>
    %147 = vector.shape_cast %146 : vector<2x1x16xf32> to vector<2x16xf32>
    %148 = vector.shape_cast %147 : vector<2x16xf32> to vector<2x16x1xf32>
    %149 = vector.broadcast %145 : vector<2x1x64xf32> to vector<2x16x64xf32>
    %150 = vector.broadcast %148 : vector<2x16x1xf32> to vector<2x16x64xf32>
    %151 = arith.mulf %149, %150 : vector<2x16x64xf32>
    %152 = arith.addf %142, %151 : vector<2x16x64xf32>
    %153 = vector.extract_strided_slice %62 {offsets = [0, 2, 0], sizes = [2, 1, 16], strides = [1, 1, 1]} : vector<2x8x16xf32> to vector<2x1x16xf32>
    %154 = vector.shape_cast %153 : vector<2x1x16xf32> to vector<2x16xf32>
    %155 = vector.shape_cast %154 : vector<2x16xf32> to vector<2x16x1xf32>
    %156 = vector.broadcast %155 : vector<2x16x1xf32> to vector<2x16x64xf32>
    %157 = arith.mulf %152, %156 : vector<2x16x64xf32>
    %cst_50 = arith.constant dense<0.000000e+00> : vector<2x64xf32>
    %158 = vector.multi_reduction <add>, %157, %cst_50 [1] : vector<2x16x64xf32> to vector<2x64xf32>
    %159 = vector.shape_cast %158 : vector<2x64xf32> to vector<2x1x64xf32>
    %c0_51 = arith.constant 0 : index
    %c2 = arith.constant 2 : index
    %c0_52 = arith.constant 0 : index
    %160 = vector.load %arg20[%c0_51, %c2, %c0_52] : memref<2x8x64xf32, #tpu.memory_space<vmem>>, vector<2x1x64xf32>
    tpu.vector_store %arg20[%c0_51, %c2, %c0_52], %159 {strides = array<i32>} : memref<2x8x64xf32, #tpu.memory_space<vmem>>, vector<2x1x64xf32>,
    %161 = vector.extract_strided_slice %74 {offsets = [0, 3, 0], sizes = [2, 1, 64], strides = [1, 1, 1]} : vector<2x8x64xf32> to vector<2x1x64xf32>
    %162 = vector.shape_cast %161 : vector<2x1x64xf32> to vector<2x64xf32>
    %163 = vector.shape_cast %162 : vector<2x64xf32> to vector<2x1x64xf32>
    %164 = vector.shape_cast %78 : vector<16x64xf32> to vector<1x16x64xf32>
    %165 = vector.broadcast %163 : vector<2x1x64xf32> to vector<2x16x64xf32>
    %166 = vector.broadcast %164 : vector<1x16x64xf32> to vector<2x16x64xf32>
    %167 = arith.mulf %165, %166 : vector<2x16x64xf32>
    %168 = math.exp %167 : vector<2x16x64xf32>
    %169 = arith.mulf %168, %152 : vector<2x16x64xf32>
    %170 = vector.extract_strided_slice %75 {offsets = [0, 3, 0], sizes = [2, 1, 64], strides = [1, 1, 1]} : vector<2x8x64xf32> to vector<2x1x64xf32>
    %171 = vector.shape_cast %170 : vector<2x1x64xf32> to vector<2x64xf32>
    %172 = vector.shape_cast %171 : vector<2x64xf32> to vector<2x1x64xf32>
    %173 = vector.extract_strided_slice %60 {offsets = [0, 3, 0], sizes = [2, 1, 16], strides = [1, 1, 1]} : vector<2x8x16xf32> to vector<2x1x16xf32>
    %174 = vector.shape_cast %173 : vector<2x1x16xf32> to vector<2x16xf32>
    %175 = vector.shape_cast %174 : vector<2x16xf32> to vector<2x16x1xf32>
    %176 = vector.broadcast %172 : vector<2x1x64xf32> to vector<2x16x64xf32>
    %177 = vector.broadcast %175 : vector<2x16x1xf32> to vector<2x16x64xf32>
    %178 = arith.mulf %176, %177 : vector<2x16x64xf32>
    %179 = arith.addf %169, %178 : vector<2x16x64xf32>
    %180 = vector.extract_strided_slice %62 {offsets = [0, 3, 0], sizes = [2, 1, 16], strides = [1, 1, 1]} : vector<2x8x16xf32> to vector<2x1x16xf32>
    %181 = vector.shape_cast %180 : vector<2x1x16xf32> to vector<2x16xf32>
    %182 = vector.shape_cast %181 : vector<2x16xf32> to vector<2x16x1xf32>
    %183 = vector.broadcast %182 : vector<2x16x1xf32> to vector<2x16x64xf32>
    %184 = arith.mulf %179, %183 : vector<2x16x64xf32>
    %cst_53 = arith.constant dense<0.000000e+00> : vector<2x64xf32>
    %185 = vector.multi_reduction <add>, %184, %cst_53 [1] : vector<2x16x64xf32> to vector<2x64xf32>
    %186 = vector.shape_cast %185 : vector<2x64xf32> to vector<2x1x64xf32>
    %c0_54 = arith.constant 0 : index
    %c3 = arith.constant 3 : index
    %c0_55 = arith.constant 0 : index
    %187 = vector.load %arg20[%c0_54, %c3, %c0_55] : memref<2x8x64xf32, #tpu.memory_space<vmem>>, vector<2x1x64xf32>
    tpu.vector_store %arg20[%c0_54, %c3, %c0_55], %186 {strides = array<i32>} : memref<2x8x64xf32, #tpu.memory_space<vmem>>, vector<2x1x64xf32>,
    %188 = vector.extract_strided_slice %74 {offsets = [0, 4, 0], sizes = [2, 1, 64], strides = [1, 1, 1]} : vector<2x8x64xf32> to vector<2x1x64xf32>
    %189 = vector.shape_cast %188 : vector<2x1x64xf32> to vector<2x64xf32>
    %190 = vector.shape_cast %189 : vector<2x64xf32> to vector<2x1x64xf32>
    %191 = vector.shape_cast %78 : vector<16x64xf32> to vector<1x16x64xf32>
    %192 = vector.broadcast %190 : vector<2x1x64xf32> to vector<2x16x64xf32>
    %193 = vector.broadcast %191 : vector<1x16x64xf32> to vector<2x16x64xf32>
    %194 = arith.mulf %192, %193 : vector<2x16x64xf32>
    %195 = math.exp %194 : vector<2x16x64xf32>
    %196 = arith.mulf %195, %179 : vector<2x16x64xf32>
    %197 = vector.extract_strided_slice %75 {offsets = [0, 4, 0], sizes = [2, 1, 64], strides = [1, 1, 1]} : vector<2x8x64xf32> to vector<2x1x64xf32>
    %198 = vector.shape_cast %197 : vector<2x1x64xf32> to vector<2x64xf32>
    %199 = vector.shape_cast %198 : vector<2x64xf32> to vector<2x1x64xf32>
    %200 = vector.extract_strided_slice %60 {offsets = [0, 4, 0], sizes = [2, 1, 16], strides = [1, 1, 1]} : vector<2x8x16xf32> to vector<2x1x16xf32>
    %201 = vector.shape_cast %200 : vector<2x1x16xf32> to vector<2x16xf32>
    %202 = vector.shape_cast %201 : vector<2x16xf32> to vector<2x16x1xf32>
    %203 = vector.broadcast %199 : vector<2x1x64xf32> to vector<2x16x64xf32>
    %204 = vector.broadcast %202 : vector<2x16x1xf32> to vector<2x16x64xf32>
    %205 = arith.mulf %203, %204 : vector<2x16x64xf32>
    %206 = arith.addf %196, %205 : vector<2x16x64xf32>
    %207 = vector.extract_strided_slice %62 {offsets = [0, 4, 0], sizes = [2, 1, 16], strides = [1, 1, 1]} : vector<2x8x16xf32> to vector<2x1x16xf32>
    %208 = vector.shape_cast %207 : vector<2x1x16xf32> to vector<2x16xf32>
    %209 = vector.shape_cast %208 : vector<2x16xf32> to vector<2x16x1xf32>
    %210 = vector.broadcast %209 : vector<2x16x1xf32> to vector<2x16x64xf32>
    %211 = arith.mulf %206, %210 : vector<2x16x64xf32>
    %cst_56 = arith.constant dense<0.000000e+00> : vector<2x64xf32>
    %212 = vector.multi_reduction <add>, %211, %cst_56 [1] : vector<2x16x64xf32> to vector<2x64xf32>
    %213 = vector.shape_cast %212 : vector<2x64xf32> to vector<2x1x64xf32>
    %c0_57 = arith.constant 0 : index
    %c4 = arith.constant 4 : index
    %c0_58 = arith.constant 0 : index
    %214 = vector.load %arg20[%c0_57, %c4, %c0_58] : memref<2x8x64xf32, #tpu.memory_space<vmem>>, vector<2x1x64xf32>
    tpu.vector_store %arg20[%c0_57, %c4, %c0_58], %213 {strides = array<i32>} : memref<2x8x64xf32, #tpu.memory_space<vmem>>, vector<2x1x64xf32>,
    %215 = vector.extract_strided_slice %74 {offsets = [0, 5, 0], sizes = [2, 1, 64], strides = [1, 1, 1]} : vector<2x8x64xf32> to vector<2x1x64xf32>
    %216 = vector.shape_cast %215 : vector<2x1x64xf32> to vector<2x64xf32>
    %217 = vector.shape_cast %216 : vector<2x64xf32> to vector<2x1x64xf32>
    %218 = vector.shape_cast %78 : vector<16x64xf32> to vector<1x16x64xf32>
    %219 = vector.broadcast %217 : vector<2x1x64xf32> to vector<2x16x64xf32>
    %220 = vector.broadcast %218 : vector<1x16x64xf32> to vector<2x16x64xf32>
    %221 = arith.mulf %219, %220 : vector<2x16x64xf32>
    %222 = math.exp %221 : vector<2x16x64xf32>
    %223 = arith.mulf %222, %206 : vector<2x16x64xf32>
    %224 = vector.extract_strided_slice %75 {offsets = [0, 5, 0], sizes = [2, 1, 64], strides = [1, 1, 1]} : vector<2x8x64xf32> to vector<2x1x64xf32>
    %225 = vector.shape_cast %224 : vector<2x1x64xf32> to vector<2x64xf32>
    %226 = vector.shape_cast %225 : vector<2x64xf32> to vector<2x1x64xf32>
    %227 = vector.extract_strided_slice %60 {offsets = [0, 5, 0], sizes = [2, 1, 16], strides = [1, 1, 1]} : vector<2x8x16xf32> to vector<2x1x16xf32>
    %228 = vector.shape_cast %227 : vector<2x1x16xf32> to vector<2x16xf32>
    %229 = vector.shape_cast %228 : vector<2x16xf32> to vector<2x16x1xf32>
    %230 = vector.broadcast %226 : vector<2x1x64xf32> to vector<2x16x64xf32>
    %231 = vector.broadcast %229 : vector<2x16x1xf32> to vector<2x16x64xf32>
    %232 = arith.mulf %230, %231 : vector<2x16x64xf32>
    %233 = arith.addf %223, %232 : vector<2x16x64xf32>
    %234 = vector.extract_strided_slice %62 {offsets = [0, 5, 0], sizes = [2, 1, 16], strides = [1, 1, 1]} : vector<2x8x16xf32> to vector<2x1x16xf32>
    %235 = vector.shape_cast %234 : vector<2x1x16xf32> to vector<2x16xf32>
    %236 = vector.shape_cast %235 : vector<2x16xf32> to vector<2x16x1xf32>
    %237 = vector.broadcast %236 : vector<2x16x1xf32> to vector<2x16x64xf32>
    %238 = arith.mulf %233, %237 : vector<2x16x64xf32>
    %cst_59 = arith.constant dense<0.000000e+00> : vector<2x64xf32>
    %239 = vector.multi_reduction <add>, %238, %cst_59 [1] : vector<2x16x64xf32> to vector<2x64xf32>
    %240 = vector.shape_cast %239 : vector<2x64xf32> to vector<2x1x64xf32>
    %c0_60 = arith.constant 0 : index
    %c5 = arith.constant 5 : index
    %c0_61 = arith.constant 0 : index
    %241 = vector.load %arg20[%c0_60, %c5, %c0_61] : memref<2x8x64xf32, #tpu.memory_space<vmem>>, vector<2x1x64xf32>
    tpu.vector_store %arg20[%c0_60, %c5, %c0_61], %240 {strides = array<i32>} : memref<2x8x64xf32, #tpu.memory_space<vmem>>, vector<2x1x64xf32>,
    %242 = vector.extract_strided_slice %74 {offsets = [0, 6, 0], sizes = [2, 1, 64], strides = [1, 1, 1]} : vector<2x8x64xf32> to vector<2x1x64xf32>
    %243 = vector.shape_cast %242 : vector<2x1x64xf32> to vector<2x64xf32>
    %244 = vector.shape_cast %243 : vector<2x64xf32> to vector<2x1x64xf32>
    %245 = vector.shape_cast %78 : vector<16x64xf32> to vector<1x16x64xf32>
    %246 = vector.broadcast %244 : vector<2x1x64xf32> to vector<2x16x64xf32>
    %247 = vector.broadcast %245 : vector<1x16x64xf32> to vector<2x16x64xf32>
    %248 = arith.mulf %246, %247 : vector<2x16x64xf32>
    %249 = math.exp %248 : vector<2x16x64xf32>
    %250 = arith.mulf %249, %233 : vector<2x16x64xf32>
    %251 = vector.extract_strided_slice %75 {offsets = [0, 6, 0], sizes = [2, 1, 64], strides = [1, 1, 1]} : vector<2x8x64xf32> to vector<2x1x64xf32>
    %252 = vector.shape_cast %251 : vector<2x1x64xf32> to vector<2x64xf32>
    %253 = vector.shape_cast %252 : vector<2x64xf32> to vector<2x1x64xf32>
    %254 = vector.extract_strided_slice %60 {offsets = [0, 6, 0], sizes = [2, 1, 16], strides = [1, 1, 1]} : vector<2x8x16xf32> to vector<2x1x16xf32>
    %255 = vector.shape_cast %254 : vector<2x1x16xf32> to vector<2x16xf32>
    %256 = vector.shape_cast %255 : vector<2x16xf32> to vector<2x16x1xf32>
    %257 = vector.broadcast %253 : vector<2x1x64xf32> to vector<2x16x64xf32>
    %258 = vector.broadcast %256 : vector<2x16x1xf32> to vector<2x16x64xf32>
    %259 = arith.mulf %257, %258 : vector<2x16x64xf32>
    %260 = arith.addf %250, %259 : vector<2x16x64xf32>
    %261 = vector.extract_strided_slice %62 {offsets = [0, 6, 0], sizes = [2, 1, 16], strides = [1, 1, 1]} : vector<2x8x16xf32> to vector<2x1x16xf32>
    %262 = vector.shape_cast %261 : vector<2x1x16xf32> to vector<2x16xf32>
    %263 = vector.shape_cast %262 : vector<2x16xf32> to vector<2x16x1xf32>
    %264 = vector.broadcast %263 : vector<2x16x1xf32> to vector<2x16x64xf32>
    %265 = arith.mulf %260, %264 : vector<2x16x64xf32>
    %cst_62 = arith.constant dense<0.000000e+00> : vector<2x64xf32>
    %266 = vector.multi_reduction <add>, %265, %cst_62 [1] : vector<2x16x64xf32> to vector<2x64xf32>
    %267 = vector.shape_cast %266 : vector<2x64xf32> to vector<2x1x64xf32>
    %c0_63 = arith.constant 0 : index
    %c6 = arith.constant 6 : index
    %c0_64 = arith.constant 0 : index
    %268 = vector.load %arg20[%c0_63, %c6, %c0_64] : memref<2x8x64xf32, #tpu.memory_space<vmem>>, vector<2x1x64xf32>
    tpu.vector_store %arg20[%c0_63, %c6, %c0_64], %267 {strides = array<i32>} : memref<2x8x64xf32, #tpu.memory_space<vmem>>, vector<2x1x64xf32>,
    %269 = vector.extract_strided_slice %74 {offsets = [0, 7, 0], sizes = [2, 1, 64], strides = [1, 1, 1]} : vector<2x8x64xf32> to vector<2x1x64xf32>
    %270 = vector.shape_cast %269 : vector<2x1x64xf32> to vector<2x64xf32>
    %271 = vector.shape_cast %270 : vector<2x64xf32> to vector<2x1x64xf32>
    %272 = vector.shape_cast %78 : vector<16x64xf32> to vector<1x16x64xf32>
    %273 = vector.broadcast %271 : vector<2x1x64xf32> to vector<2x16x64xf32>
    %274 = vector.broadcast %272 : vector<1x16x64xf32> to vector<2x16x64xf32>
    %275 = arith.mulf %273, %274 : vector<2x16x64xf32>
    %276 = math.exp %275 : vector<2x16x64xf32>
    %277 = arith.mulf %276, %260 : vector<2x16x64xf32>
    %278 = vector.extract_strided_slice %75 {offsets = [0, 7, 0], sizes = [2, 1, 64], strides = [1, 1, 1]} : vector<2x8x64xf32> to vector<2x1x64xf32>
    %279 = vector.shape_cast %278 : vector<2x1x64xf32> to vector<2x64xf32>
    %280 = vector.shape_cast %279 : vector<2x64xf32> to vector<2x1x64xf32>
    %281 = vector.extract_strided_slice %60 {offsets = [0, 7, 0], sizes = [2, 1, 16], strides = [1, 1, 1]} : vector<2x8x16xf32> to vector<2x1x16xf32>
    %282 = vector.shape_cast %281 : vector<2x1x16xf32> to vector<2x16xf32>
    %283 = vector.shape_cast %282 : vector<2x16xf32> to vector<2x16x1xf32>
    %284 = vector.broadcast %280 : vector<2x1x64xf32> to vector<2x16x64xf32>
    %285 = vector.broadcast %283 : vector<2x16x1xf32> to vector<2x16x64xf32>
    %286 = arith.mulf %284, %285 : vector<2x16x64xf32>
    %287 = arith.addf %277, %286 : vector<2x16x64xf32>
    %288 = vector.extract_strided_slice %62 {offsets = [0, 7, 0], sizes = [2, 1, 16], strides = [1, 1, 1]} : vector<2x8x16xf32> to vector<2x1x16xf32>
    %289 = vector.shape_cast %288 : vector<2x1x16xf32> to vector<2x16xf32>
    %290 = vector.shape_cast %289 : vector<2x16xf32> to vector<2x16x1xf32>
    %291 = vector.broadcast %290 : vector<2x16x1xf32> to vector<2x16x64xf32>
    %292 = arith.mulf %287, %291 : vector<2x16x64xf32>
    %cst_65 = arith.constant dense<0.000000e+00> : vector<2x64xf32>
    %293 = vector.multi_reduction <add>, %292, %cst_65 [1] : vector<2x16x64xf32> to vector<2x64xf32>
    %294 = vector.shape_cast %293 : vector<2x64xf32> to vector<2x1x64xf32>
    %c0_66 = arith.constant 0 : index
    %c7 = arith.constant 7 : index
    %c0_67 = arith.constant 0 : index
    %295 = vector.load %arg20[%c0_66, %c7, %c0_67] : memref<2x8x64xf32, #tpu.memory_space<vmem>>, vector<2x1x64xf32>
    tpu.vector_store %arg20[%c0_66, %c7, %c0_67], %294 {strides = array<i32>} : memref<2x8x64xf32, #tpu.memory_space<vmem>>, vector<2x1x64xf32>,
    %c0_68 = arith.constant 0 : index
    %c0_69 = arith.constant 0 : index
    %c0_70 = arith.constant 0 : index
    %296 = vector.load %arg20[%c0_68, %c0_69, %c0_70] : memref<2x8x64xf32, #tpu.memory_space<vmem>>, vector<2x8x64xf32>
    %297 = vector.shape_cast %296 : vector<2x8x64xf32> to vector<16x64xf32>
    %298 = vector.broadcast %8 : vector<1x64xf32> to vector<16x64xf32>
    %299 = arith.mulf %56, %298 : vector<16x64xf32>
    %300 = arith.addf %297, %299 : vector<16x64xf32>
    %301 = arith.negf %21 : vector<16x64xf32>
    %302 = math.exp %301 : vector<16x64xf32>
    %cst_71 = arith.constant 1.000000e+00 : f32
    %303 = vector.broadcast %cst_71 : f32 to vector<16x64xf32>
    %304 = arith.addf %303, %302 : vector<16x64xf32>
    %305 = arith.divf %303, %304 : vector<16x64xf32>
    %306 = arith.mulf %21, %305 : vector<16x64xf32>
    %307 = arith.mulf %300, %306 : vector<16x64xf32>
    %cst_72 = arith.constant dense<0.000000e+00> : vector<16x32xf32>
    %308 = tpu.matmul %307, %9, %cst_72 {dimension_numbers = #tpu.dot_dimension_numbers<[1], [0], [0], [1], [0, 0, 1, 1], [], []>} : vector<16x64xf32>, vector<64x32xf32>, vector<16x32xf32> -> vector<16x32xf32>
    %309 = arith.addf %308, %0 : vector<16x32xf32>
    %cst_73 = arith.constant dense<0.000000e+00> : vector<16xf32>
    %310 = vector.multi_reduction <add>, %309, %cst_73 [1] : vector<16x32xf32> to vector<16xf32>
    %311 = vector.shape_cast %310 : vector<16xf32> to vector<16x1xf32>
    %cst_74 = arith.constant 3.200000e+01 : f32
    %312 = vector.broadcast %cst_74 : f32 to vector<16x1xf32>
    %313 = arith.divf %311, %312 : vector<16x1xf32>
    %314 = vector.broadcast %313 : vector<16x1xf32> to vector<16x32xf32>
    %315 = arith.subf %309, %314 : vector<16x32xf32>
    %316 = arith.mulf %315, %315 : vector<16x32xf32>
    %cst_75 = arith.constant dense<0.000000e+00> : vector<16xf32>
    %317 = vector.multi_reduction <add>, %316, %cst_75 [1] : vector<16x32xf32> to vector<16xf32>
    %318 = vector.shape_cast %317 : vector<16xf32> to vector<16x1xf32>
    %cst_76 = arith.constant 3.200000e+01 : f32
    %319 = vector.broadcast %cst_76 : f32 to vector<16x1xf32>
    %320 = arith.divf %318, %319 : vector<16x1xf32>
    %321 = vector.broadcast %313 : vector<16x1xf32> to vector<16x32xf32>
    %322 = arith.subf %309, %321 : vector<16x32xf32>
    %cst_77 = arith.constant 9.99999996E-13 : f32
    %323 = vector.broadcast %cst_77 : f32 to vector<16x1xf32>
    %324 = arith.addf %320, %323 : vector<16x1xf32>
    %325 = math.rsqrt %324 : vector<16x1xf32>
    %326 = vector.broadcast %325 : vector<16x1xf32> to vector<16x32xf32>
    %327 = arith.mulf %322, %326 : vector<16x32xf32>
    %328 = vector.broadcast %10 : vector<1x32xf32> to vector<16x32xf32>
    %329 = arith.mulf %327, %328 : vector<16x32xf32>
    %330 = vector.broadcast %11 : vector<1x32xf32> to vector<16x32xf32>
    %331 = arith.addf %329, %330 : vector<16x32xf32>
    %cst_78 = arith.constant dense<0.000000e+00> : vector<16x128xf32>
    %332 = tpu.matmul %331, %12, %cst_78 {dimension_numbers = #tpu.dot_dimension_numbers<[1], [0], [0], [1], [0, 0, 1, 1], [], []>} : vector<16x32xf32>, vector<32x128xf32>, vector<16x128xf32> -> vector<16x128xf32>
    %333 = vector.broadcast %13 : vector<1x128xf32> to vector<16x128xf32>
    %334 = arith.addf %332, %333 : vector<16x128xf32>
    %cst_79 = arith.constant 5.000000e-01 : f32
    %335 = vector.broadcast %cst_79 : f32 to vector<16x128xf32>
    %336 = arith.mulf %335, %334 : vector<16x128xf32>
    %cst_80 = arith.constant 4.471500e-02 : f32
    %337 = vector.broadcast %cst_80 : f32 to vector<16x128xf32>
    %338 = arith.mulf %337, %334 : vector<16x128xf32>
    %339 = arith.mulf %338, %334 : vector<16x128xf32>
    %340 = arith.mulf %339, %334 : vector<16x128xf32>
    %341 = arith.addf %334, %340 : vector<16x128xf32>
    %cst_81 = arith.constant 0.797884583 : f32
    %342 = vector.broadcast %cst_81 : f32 to vector<16x128xf32>
    %343 = arith.mulf %342, %341 : vector<16x128xf32>
    %344 = math.tanh %343 : vector<16x128xf32>
    %cst_82 = arith.constant 1.000000e+00 : f32
    %345 = vector.broadcast %cst_82 : f32 to vector<16x128xf32>
    %346 = arith.addf %345, %344 : vector<16x128xf32>
    %347 = arith.mulf %336, %346 : vector<16x128xf32>
    %cst_83 = arith.constant dense<0.000000e+00> : vector<16x32xf32>
    %348 = tpu.matmul %347, %14, %cst_83 {dimension_numbers = #tpu.dot_dimension_numbers<[1], [0], [0], [1], [0, 0, 1, 1], [], []>} : vector<16x128xf32>, vector<128x32xf32>, vector<16x32xf32> -> vector<16x32xf32>
    %349 = vector.broadcast %15 : vector<1x32xf32> to vector<16x32xf32>
    %350 = arith.addf %348, %349 : vector<16x32xf32>
    %351 = arith.addf %350, %331 : vector<16x32xf32>
    %cst_84 = arith.constant dense<0.000000e+00> : vector<16xf32>
    %352 = vector.multi_reduction <add>, %351, %cst_84 [1] : vector<16x32xf32> to vector<16xf32>
    %353 = vector.shape_cast %352 : vector<16xf32> to vector<16x1xf32>
    %cst_85 = arith.constant 3.200000e+01 : f32
    %354 = vector.broadcast %cst_85 : f32 to vector<16x1xf32>
    %355 = arith.divf %353, %354 : vector<16x1xf32>
    %356 = vector.broadcast %355 : vector<16x1xf32> to vector<16x32xf32>
    %357 = arith.subf %351, %356 : vector<16x32xf32>
    %358 = arith.mulf %357, %357 : vector<16x32xf32>
    %cst_86 = arith.constant dense<0.000000e+00> : vector<16xf32>
    %359 = vector.multi_reduction <add>, %358, %cst_86 [1] : vector<16x32xf32> to vector<16xf32>
    %360 = vector.shape_cast %359 : vector<16xf32> to vector<16x1xf32>
    %cst_87 = arith.constant 3.200000e+01 : f32
    %361 = vector.broadcast %cst_87 : f32 to vector<16x1xf32>
    %362 = arith.divf %360, %361 : vector<16x1xf32>
    %363 = vector.broadcast %355 : vector<16x1xf32> to vector<16x32xf32>
    %364 = arith.subf %351, %363 : vector<16x32xf32>
    %cst_88 = arith.constant 9.99999996E-13 : f32
    %365 = vector.broadcast %cst_88 : f32 to vector<16x1xf32>
    %366 = arith.addf %362, %365 : vector<16x1xf32>
    %367 = math.rsqrt %366 : vector<16x1xf32>
    %368 = vector.broadcast %367 : vector<16x1xf32> to vector<16x32xf32>
    %369 = arith.mulf %364, %368 : vector<16x32xf32>
    %370 = vector.broadcast %16 : vector<1x32xf32> to vector<16x32xf32>
    %371 = arith.mulf %369, %370 : vector<16x32xf32>
    %372 = vector.broadcast %17 : vector<1x32xf32> to vector<16x32xf32>
    %373 = arith.addf %371, %372 : vector<16x32xf32>
    %c0_89 = arith.constant 0 : index
    %c0_90 = arith.constant 0 : index
    %374 = vector.load %arg19[%c0_89, %c0_90] : memref<16x32xf32, #tpu.memory_space<vmem>>, vector<16x32xf32>
    tpu.vector_store %arg19[%c0_89, %c0_90], %373 {strides = array<i32>} : memref<16x32xf32, #tpu.memory_space<vmem>>, vector<16x32xf32>,
    return
  }
  func.func @transform_0(%arg0: i32) -> (i32, i32) {
    %c0_i32 = arith.constant 0 : i32
    %c0_i32_0 = arith.constant 0 : i32
    return %arg0, %c0_i32 : i32, i32
  }
  func.func @transform_1(%arg0: i32) -> (i32, i32) {
    %c0_i32 = arith.constant 0 : i32
    %c0_i32_0 = arith.constant 0 : i32
    %c0_i32_1 = arith.constant 0 : i32
    return %c0_i32, %c0_i32_0 : i32, i32
  }
  func.func @transform_2(%arg0: i32) -> (i32, i32) {
    %c0_i32 = arith.constant 0 : i32
    %c0_i32_0 = arith.constant 0 : i32
    %c0_i32_1 = arith.constant 0 : i32
    return %c0_i32, %c0_i32_0 : i32, i32
  }
  func.func @transform_3(%arg0: i32) -> (i32, i32) {
    %c0_i32 = arith.constant 0 : i32
    %c0_i32_0 = arith.constant 0 : i32
    %c0_i32_1 = arith.constant 0 : i32
    return %c0_i32, %c0_i32_0 : i32, i32
  }
  func.func @transform_4(%arg0: i32) -> (i32, i32) {
    %c0_i32 = arith.constant 0 : i32
    %c0_i32_0 = arith.constant 0 : i32
    %c0_i32_1 = arith.constant 0 : i32
    return %c0_i32, %c0_i32_0 : i32, i32
  }
  func.func @transform_5(%arg0: i32) -> (i32, i32) {
    %c0_i32 = arith.constant 0 : i32
    %c0_i32_0 = arith.constant 0 : i32
    %c0_i32_1 = arith.constant 0 : i32
    return %c0_i32, %c0_i32_0 : i32, i32
  }
  func.func @transform_6(%arg0: i32) -> (i32, i32) {
    %c0_i32 = arith.constant 0 : i32
    %c0_i32_0 = arith.constant 0 : i32
    %c0_i32_1 = arith.constant 0 : i32
    return %c0_i32, %c0_i32_0 : i32, i32
  }
  func.func @transform_7(%arg0: i32) -> (i32, i32) {
    %c0_i32 = arith.constant 0 : i32
    %c0_i32_0 = arith.constant 0 : i32
    %c0_i32_1 = arith.constant 0 : i32
    return %c0_i32, %c0_i32_0 : i32, i32
  }
  func.func @transform_8(%arg0: i32) -> (i32, i32) {
    %c0_i32 = arith.constant 0 : i32
    %c0_i32_0 = arith.constant 0 : i32
    %c0_i32_1 = arith.constant 0 : i32
    return %c0_i32, %c0_i32_0 : i32, i32
  }
  func.func @transform_9(%arg0: i32) -> (i32, i32) {
    %c0_i32 = arith.constant 0 : i32
    %c0_i32_0 = arith.constant 0 : i32
    %c0_i32_1 = arith.constant 0 : i32
    return %c0_i32, %c0_i32_0 : i32, i32
  }
  func.func @transform_10(%arg0: i32) -> (i32, i32) {
    %c0_i32 = arith.constant 0 : i32
    %c0_i32_0 = arith.constant 0 : i32
    %c0_i32_1 = arith.constant 0 : i32
    return %c0_i32, %c0_i32_0 : i32, i32
  }
  func.func @transform_11(%arg0: i32) -> (i32, i32) {
    %c0_i32 = arith.constant 0 : i32
    %c0_i32_0 = arith.constant 0 : i32
    %c0_i32_1 = arith.constant 0 : i32
    return %c0_i32, %c0_i32_0 : i32, i32
  }
  func.func @transform_12(%arg0: i32) -> (i32, i32) {
    %c0_i32 = arith.constant 0 : i32
    %c0_i32_0 = arith.constant 0 : i32
    %c0_i32_1 = arith.constant 0 : i32
    return %c0_i32, %c0_i32_0 : i32, i32
  }
  func.func @transform_13(%arg0: i32) -> (i32, i32) {
    %c0_i32 = arith.constant 0 : i32
    %c0_i32_0 = arith.constant 0 : i32
    %c0_i32_1 = arith.constant 0 : i32
    return %c0_i32, %c0_i32_0 : i32, i32
  }
  func.func @transform_14(%arg0: i32) -> (i32, i32) {
    %c0_i32 = arith.constant 0 : i32
    %c0_i32_0 = arith.constant 0 : i32
    %c0_i32_1 = arith.constant 0 : i32
    return %c0_i32, %c0_i32_0 : i32, i32
  }
  func.func @transform_15(%arg0: i32) -> (i32, i32) {
    %c0_i32 = arith.constant 0 : i32
    %c0_i32_0 = arith.constant 0 : i32
    %c0_i32_1 = arith.constant 0 : i32
    return %c0_i32, %c0_i32_0 : i32, i32
  }
  func.func @transform_16(%arg0: i32) -> (i32, i32) {
    %c0_i32 = arith.constant 0 : i32
    %c0_i32_0 = arith.constant 0 : i32
    %c0_i32_1 = arith.constant 0 : i32
    return %c0_i32, %c0_i32_0 : i32, i32
  }
  func.func @transform_17(%arg0: i32) -> (i32, i32) {
    %c0_i32 = arith.constant 0 : i32
    %c0_i32_0 = arith.constant 0 : i32
    %c0_i32_1 = arith.constant 0 : i32
    return %c0_i32, %c0_i32_0 : i32, i32
  }
  func.func @transform_18(%arg0: i32) -> (i32, i32) {
    %c0_i32 = arith.constant 0 : i32
    %c0_i32_0 = arith.constant 0 : i32
    return %arg0, %c0_i32 : i32, i32
  }
}

</mosaic_0001>

<bundles_post_ra>
// kernel: tpu_custom_call.1
= control target key start
LH: loop header
LB: loop body
LE: loop exit
PB: predicated region body
PF: predicated region fallthrough
CT: control target
= control target key end

     0   :  { %s2513_s0 = inlined_call_operand.vmem [shape: f32[16,32], index: 0, kind: input, shape index: {}]   ;;  %s2514_s1 = inlined_call_operand.vmem [shape: f32[32,128], index: 1, kind: input, shape index: {}]   ;;  %s2515_s2 = inlined_call_operand.vmem [shape: f32[4,64], index: 2, kind: input, shape index: {}]   ;;  %s2516_s3 = inlined_call_operand.vmem [shape: f32[1,64], index: 3, kind: input, shape index: {}]   ;;  %s2517_s4 = inlined_call_operand.vmem [shape: f32[64,34], index: 4, kind: input, shape index: {}]   ;;  %s2518_s5 = inlined_call_operand.vmem [shape: f32[2,64], index: 5, kind: input, shape index: {}]   ;;  %s2519_s6 = inlined_call_operand.vmem [shape: f32[1,64], index: 6, kind: input, shape index: {}]   ;;  %s2520_s7 = inlined_call_operand.vmem [shape: f32[16,64], index: 7, kind: input, shape index: {}]   ;;  %s2521_s8 = inlined_call_operand.vmem [shape: f32[1,64], index: 8, kind: input, shape index: {}]   ;;  %s2522_s9 = inlined_call_operand.vmem [shape: f32[64,32], index: 9, kind: input, shape index: {}]   ;;  %s2523_s10 = inlined_call_operand.vmem [shape: f32[1,32], index: 10, kind: input, shape index: {}]   ;;  %s2524_s11 = inlined_call_operand.vmem [shape: f32[1,32], index: 11, kind: input, shape index: {}]   ;;  %s2525_s12 = inlined_call_operand.vmem [shape: f32[32,128], index: 12, kind: input, shape index: {}]   ;;  %s2526_s13 = inlined_call_operand.vmem [shape: f32[1,128], index: 13, kind: input, shape index: {}]   ;;  %s2527_s14 = inlined_call_operand.vmem [shape: f32[128,32], index: 14, kind: input, shape index: {}]   ;;  %s2528_s15 = inlined_call_operand.vmem [shape: f32[1,32], index: 15, kind: input, shape index: {}]   ;;  %s2529_s16 = inlined_call_operand.vmem [shape: f32[1,32], index: 16, kind: input, shape index: {}]   ;;  %s2530_s17 = inlined_call_operand.vmem [shape: f32[1,32], index: 17, kind: input, shape index: {}]   ;;  %s2531_s18 = inlined_call_operand.hbm [shape: f32[16,32], index: 18, kind: output, shape index: {}]  }
   0x1   :  { %2534 = sst [smem:[#allocation6_spill]] %s2513_s0 }
   0x2   :  { %2535 = sst [smem:[#allocation7_spill]] %s2514_s1 }
   0x3   :  { %2536 = sst [smem:[#allocation8_spill]] %s2515_s2 }
   0x4   :  { %s2537_s29 = sld [smem:[#allocation7_spill]]  ;;  %vm115_vm0 = vcmask 261120  }
   0x5   :  { %s2538_s23 = sld [smem:[#allocation6_spill]] }
   0xa   :  { %v65_v0 = vld [vmem:[%s2537_s29 + $0x18] sm:$0xff]  ;;  %v64_v1 = vld [vmem:[%s2537_s29 + $0x10] sm:$0xff]  ;;  %v63_v2 = vld [vmem:[%s2537_s29 + $0x8] sm:$0xff] }
   0xb   :  { %134 = vmatpush.msra.mxu1 %v65_v0  ;;  %v62_v3 = vld [vmem:[%s2537_s29] sm:$0xff] }
   0xc   :  { %v60_v4 = vld [vmem:[%s2538_s23] sm:$0xff] }
   0xd   :  { %135 = vmatpush.msra.mxu1 %v64_v1 }
   0xf   :  { %136 = vmatpush.msra.mxu1 %v63_v2 }
  0x10   :  { %23 = vsyncpa [#allocation4], 0  ;;  %v61_v5 = vld [vmem:[%s2538_s23 + $0x8] sm:$0xff]  ;;  %s2539_s28 = sld [smem:[#allocation8_spill]]  ;;  %v75_v7 = vld [vmem:[%s2517_s4 + $0x38] sm:$0xff]  ;;  %vm151_vm1 = vcmask 1042432  }
  0x11   :  { %137 = vmatpush.msra.mxu1 %v62_v3  ;;  %v74_v12 = vld [vmem:[%s2517_s4 + $0x30] sm:$0xff]  ;;  %v73_v15 = vld [vmem:[%s2517_s4 + $0x28] sm:$0xff]  ;;  %v1559_v16 = vld [vmem:[%s2516_s3] ss:$0 sm:$0xff]  ;;  %vm171_vm2 = vcmask 1046528   ;;  %vm191_vm3 = vcmask 1045504  }
  0x12   :  { %1485 = vmatmul.msk.f32.vlgmr.msra.gmra.mxu1 %vm115_vm0, %v60_v4  ;;  %v72_v23 = vld [vmem:[%s2517_s4 + $0x20] sm:$0xff]  ;;  %v71_v28 = vld [vmem:[%s2517_s4 + $0x18] sm:$0xff]  ;;  %v70_v29 = vld [vmem:[%s2517_s4 + $0x10] sm:$0xff]  ;;  %vm211_vm4 = vcmask 1044480   ;;  %v386_v4 = vlaneseq  ;;  %vm262_vm9 = vcmask 523264   ;;  %vm302_vm14 = vcmask 1041408  }
  0x13   :  { %277 = vmatpush.msrb.mxu1 %v75_v7  ;;  %v69_v34 = vld [vmem:[%s2517_s4 + $0x8] sm:$0xff]  ;;  %v68_v40 = vld [vmem:[%s2517_s4] sm:$0xff]  ;;  %vm295_vm15 = vcmask 15360   ;;  %s1473_s24 = sshll.u32 %s2531_s18, 4  ;;  %s1705_s25 = smov 128   ;;  %s1474_s24 = int_to_ptr.hbm [resolvable:$true] %s1473_s24 }
  0x14   :  { %v1866_v7 = vshrl.u32 %v386_v4, 7  ;;  %s1706_s3 = smov 8  }
  0x15   :  { %278 = vmatpush.msrb.mxu1 %v74_v12 }
  0x16   :  { %v66_v6 = vld [vmem:[%s2539_s28] sm:$0xf] }
  0x17   :  { %v162_v8 = vperm.slane %v66_v6, 1  ;;  %v182_v9 = vperm.slane %v66_v6, 2  ;;  %v157_v11 = vperm.slane %v66_v6, 0  ;;  %v202_v14 = vperm.slane %v66_v6, 3  ;;  %279 = vmatpush.msrb.mxu1 %v73_v15 }
  0x19   :  { %280 = vmatpush.msrb.mxu1 %v72_v23 }
  0x1a   :  { %1486 = vmatmul.msk.f32.gmra.mxu1 %vm115_vm0, %v61_v5 }
  0x1b   :  { %281 = vmatpush.msrb.mxu1 %v71_v28 }
  0x1d   :  { %282 = vmatpush.msrb.mxu1 %v70_v29 }
  0x1f   :  { %283 = vmatpush.msrb.mxu1 %v69_v34 }
  0x21   :  { %284 = vmatpush.msrb.mxu1 %v68_v40 }
  0x8f   :  { %v1828_v10 = vpop.f32.mrf.mxu1 }
  0x90   :  { %v147_v13 = vrot.slane %v1828_v10, 5 }
  0x92   :  { %v152_v17 = vsel %vm151_vm1, 0.0, %v147_v13  ;;  %v164_v18 = vmul.f32 %v162_v8, %v147_v13  ;;  %v184_v19 = vmul.f32 %v182_v9, %v147_v13  ;;  %v204_v25 = vmul.f32 %v202_v14, %v147_v13 }
  0x93   :  { %v158_v20 = vmul.f32 %v157_v11, %v152_v17  ;;  %v163_v21 = vmul.f32 %v162_v8, %v152_v17  ;;  %v183_v22 = vmul.f32 %v182_v9, %v152_v17  ;;  %v203_v26 = vmul.f32 %v202_v14, %v152_v17 }
  0x94   :  { %v173_v24 = vrot.slane %v164_v18, 1  ;;  %v193_v32 = vrot.slane %v184_v19, 2  ;;  %v213_v36 = vrot.slane %v204_v25, 3 }
  0x95   :  { %v172_v27 = vrot.slane %v163_v21, 1  ;;  %v160_v30 = vadd.f32 %v1559_v16, %v158_v20  ;;  %v192_v31 = vrot.slane %v183_v22, 2  ;;  %v212_v39 = vrot.slane %v203_v26, 3 }
  0x97   :  { %v1850_v33 = vpop.f32.mrf.mxu1  ;;  %v174_v35 = vsel %vm171_vm2, %v172_v27, %v173_v24  ;;  %v194_v43 = vsel %vm191_vm3, %v192_v31, %v193_v32  ;;  %v214_v48 = vsel %vm211_vm4, %v212_v39, %v213_v36  ;;  %v76_v36 = vld [vmem:[%s2518_s5] sm:$0x3] }
  0x98   :  { %v148_v37 = vrot.slane %v1850_v33, 5  ;;  %v180_v38 = vadd.f32 %v174_v35, %v160_v30  ;;  %1491 = vmatpush.msk.msra.mxu2 %vm302_vm14, %v76_v36 }
  0x9a   :  { %v153_v41 = vsel %vm151_vm1, 0.0, %v148_v37  ;;  %v166_v42 = vmul.f32 %v162_v8, %v148_v37  ;;  %v186_v45 = vmul.f32 %v182_v9, %v148_v37  ;;  %v200_v46 = vadd.f32 %v194_v43, %v180_v38 }
  0x9b   :  { %v165_v44 = vmul.f32 %v162_v8, %v153_v41  ;;  %v206_v47 = vmul.f32 %v202_v14, %v148_v37  ;;  %v159_v51 = vmul.f32 %v157_v11, %v153_v41  ;;  %v185_v55 = vmul.f32 %v182_v9, %v153_v41 }
  0x9c   :  { %v176_v49 = vrot.slane %v166_v42, 1  ;;  %v220_v50 = vadd.f32 %v214_v48, %v200_v46  ;;  %v196_v53 = vrot.slane %v186_v45, 2  ;;  %v205_v56 = vmul.f32 %v202_v14, %v153_v41 }
  0x9d   :  { %v175_v52 = vrot.slane %v165_v44, 1  ;;  %v161_v57 = vadd.f32 %v1559_v16, %v159_v51  ;;  %v216_v59 = vrot.slane %v206_v47, 3  ;;  %v195_v60 = vrot.slane %v185_v55, 2 }
  0x9e   :  { %v1487_v54 = vmul.f32 -1.442695, %v220_v50  ;;  %v215_v61 = vrot.slane %v205_v56, 3  ;;  %v1869_v8 = vadd.s32 10, %v1866_v7  ;;  %v1872_v9 = vadd.s32 2, %v1866_v7 }
  0x9f   :  { %v177_v58 = vsel %vm171_vm2, %v175_v52, %v176_v49  ;;  %v197_v63 = vsel %vm191_vm3, %v195_v60, %v196_v53  ;;  %v1907_v46 = vadd.s32 18, %v1866_v7  ;;  %v1917_v48 = vadd.s32 26, %v1866_v7 }
  0xa0   :  { %1568 = vpow2.f32 %v1487_v54  ;;  %v181_v62 = vadd.f32 %v177_v58, %v161_v57  ;;  %v217_v0 = vsel %vm211_vm4, %v215_v61, %v216_v59  ;;  %1510 = vset.pattern.permute.xlu2 %v1869_v8  ;;  %1507 = vset.pattern.permute.xlu1 %v1872_v9  ;;  %v79_v58 = vld [vmem:[%s2520_s7 + $0x8] sm:$0xff]  ;;  %vm467_vm2 = vcmask 516096  }
  0xa1   :  { %1505 = vset.pattern.permute.xlu0 %v1872_v9  ;;  %v363_v61 = vmul.f32 1.442695, %v79_v58 }
  0xa2   :  { %v201_v1 = vadd.f32 %v197_v63, %v181_v62 }
  0xa4   :  { %v221_v3 = vadd.f32 %v217_v0, %v201_v1  ;;  %v78_v0 = vld [vmem:[%s2520_s7] sm:$0xff]  ;;  %s1702_s7 = smov 64  }
  0xa6   :  { %v1569_v2 = vpop.eup %1568  ;;  %v1488_v6 = vmul.f32 -1.442695, %v221_v3 }
  0xa7   :  { %v228_v5 = vadd.f32 1.0, %v1569_v2 }
  0xa9   :  { %1570 = vrcp.f32 %v228_v5  ;;  %v241_v16 = vand.u32 2147483648, %v228_v5  ;;  %v239_v18 = vand.u32 2147483647, %v228_v5  ;;  %vm235_vm6 = vweird.f32 %v228_v5 }
  0xaa   :  { %1572 = vpow2.f32 %v1488_v6 }
  0xab   :  { %v242_v20 = vor.u32 1.1754944e-38, %v241_v16  ;;  %vm240_vm8 = vcmp.eq.f32.partialorder %v239_v18, 8.507059e+37 }
  0xaf   :  { %v1571_v11 = vpop.eup %1570 }
  0xb0   :  { %v1573_v12 = vpop.eup %1572  ;;  %v231_v13 = vmul.f32 %v1571_v11, %v228_v5  ;;  %vm236_vm5 = vweird.f32 %v1571_v11 }
  0xb1   :  { %v229_v14 = vadd.f32 1.0, %v1573_v12  ;;  %vm237_vm7 = vmor %vm235_vm6, %vm236_vm5 }
  0xb2   :  { %v232_v15 = vsub.f32 1.0, %v231_v13 }
  0xb3   :  { %1574 = vrcp.f32 %v229_v14  ;;  %v256_v26 = vand.u32 2147483648, %v229_v14  ;;  %vm250_vm10 = vweird.f32 %v229_v14  ;;  %v254_v28 = vand.u32 2147483647, %v229_v14 }
  0xb4   :  { %v233_v17 = vmul.f32 %v1571_v11, %v232_v15 }
  0xb5   :  { %v257_v30 = vor.u32 1.1754944e-38, %v256_v26  ;;  %vm255_vm13 = vcmp.eq.f32.partialorder %v254_v28, 8.507059e+37 }
  0xb6   :  { %v234_v19 = vadd.f32 %v1571_v11, %v233_v17 }
  0xb8   :  { %v238_v21 = vsel %vm237_vm7, %v1571_v11, %v234_v19 }
  0xb9   :  { %v1575_v22 = vpop.eup %1574  ;;  %v243_v23 = vsel %vm240_vm8, %v242_v20, %v238_v21 }
  0xba   :  { %v1877_v24 = vmul.f32 %v243_v23, %v220_v50  ;;  %v246_v25 = vmul.f32 %v1575_v22, %v229_v14  ;;  %vm251_vm11 = vweird.f32 %v1575_v22  ;;  %v1939_v50 = vld [vmem:[%s2519_s6] ss:$0 sm:$0xff] }
  0xbb   :  { %vm252_vm12 = vmor %vm250_vm10, %vm251_vm11 }
  0xbc   :  { %1489 = vmatmul.msk.f32.vlgmr.msrb.gmra.mxu1 %vm262_vm9, %v1877_v24  ;;  %v247_v27 = vsub.f32 1.0, %v246_v25 }
  0xbe   :  { %v248_v29 = vmul.f32 %v1575_v22, %v247_v27 }
  0xc0   :  { %v249_v31 = vadd.f32 %v1575_v22, %v248_v29 }
  0xc2   :  { %v253_v32 = vsel %vm252_vm12, %v1575_v22, %v249_v31 }
  0xc3   :  { %v258_v34 = vsel %vm255_vm13, %v257_v30, %v253_v32 }
  0xc4   :  { %v1881_v35 = vmul.f32 %v258_v34, %v221_v3  ;;  %v361_v3 = vmul.f32 1.442695, %v78_v0 }
  0xc6   :  { %1490 = vmatmul.msk.f32.gmra.mxu1 %vm262_vm9, %v1881_v35 }
 0x139   :  { %v286_v37 = vpop.f32.mrf.mxu1 }
 0x13a   :  { %1492 = vmatmul.msk.f32.vlgmr.msra.gmra.mxu2 %vm295_vm15, %v286_v37  ;;  %v590_v38 = vperm.slane %v286_v37, 2  ;;  %v488_v39 = vperm.slane %v286_v37, 1  ;;  %v385_v40 = vperm.slane %v286_v37, 0  ;;  %v692_v42 = vperm.slane %v286_v37, 3 }
 0x13b   :  { %v1897_v43 = vperm.slane %v286_v37, 4  ;;  %v1899_v44 = vperm.slane %v286_v37, 5  ;;  %v998_v45 = vperm.slane %v286_v37, 6  ;;  %v1912_v47 = vperm.slane %v286_v37, 7 }
 0x13c   :  { %601 = vperm.xlu2 %1510, %v590_v38   ;;  %493 = vperm.xlu1 %1507, %v488_v39  }
 0x13d   :  { %390 = vperm.xlu0 %1505, %v385_v40  }
 0x143   :  { %v1888_v41 = vpop.f32.mrf.mxu1 }
 0x144   :  { %1493 = vmatmul.msk.f32.gmra.mxu2 %vm295_vm15, %v1888_v41  ;;  %1511 = vset.pattern.permute.xlu2 %v1872_v9  ;;  %v1934_v49 = vperm.slane %v1888_v41, 1  ;;  %v1954_v59 = vperm.slane %v1888_v41, 2  ;;  %v1978_v19 = vperm.slane %v1888_v41, 0 }
 0x145   :  { %1508 = vset.pattern.permute.xlu1 %v1869_v8  ;;  %1506 = vset.pattern.permute.xlu0 %v1869_v8 }
 0x14c   :  { %697 = vperm.xlu2 %1511, %v692_v42  }
 0x14d   :  { %499 = vperm.xlu1 %1508, %v488_v39   ;;  %396 = vperm.xlu0 %1506, %v385_v40  }
 0x154   :  { %1514 = vset.pattern.permute.xlu2 %v1869_v8 }
 0x155   :  { %1509 = vset.pattern.permute.xlu1 %v1872_v9  ;;  %1515 = vset.pattern.permute.xlu0 %v1872_v9 }
 0x15c   :  { %805 = vperm.xlu2 %1514, %v1897_v43  }
 0x15d   :  { %595 = vperm.xlu1 %1509, %v590_v38   ;;  %901 = vperm.xlu0 %1515, %v1899_v44  }
 0x164   :  { %1517 = vset.pattern.permute.xlu2 %v1872_v9 }
 0x165   :  { %1512 = vset.pattern.permute.xlu1 %v1869_v8  ;;  %1518 = vset.pattern.permute.xlu0 %v1869_v8 }
 0x16c   :  { %1003 = vperm.xlu2 %1517, %v998_v45  }
 0x16d   :  { %703 = vperm.xlu1 %1512, %v692_v42   ;;  %1009 = vperm.xlu0 %1518, %v998_v45  }
 0x174   :  { %1520 = vset.pattern.permute.xlu2 %v1869_v8 }
 0x175   :  { %1513 = vset.pattern.permute.xlu1 %v1872_v9  ;;  %1521 = vset.pattern.permute.xlu0 %v1907_v46 }
 0x17c   :  { %1111 = vperm.xlu2 %1520, %v1912_v47  }
 0x17d   :  { %799 = vperm.xlu1 %1513, %v1897_v43   ;;  %425 = vperm.xlu0 %1521, %v385_v40  }
 0x184   :  { %1523 = vset.pattern.permute.xlu2 %v1907_v46 }
 0x185   :  { %1516 = vset.pattern.permute.xlu1 %v1869_v8  ;;  %1524 = vset.pattern.permute.xlu0 %v1917_v48 }
 0x18c   :  { %528 = vperm.xlu2 %1523, %v488_v39  }
 0x18d   :  { %907 = vperm.xlu1 %1516, %v1899_v44   ;;  %636 = vperm.xlu0 %1524, %v590_v38  }
 0x194   :  { %630 = vperm.xlu2 %1523, %v590_v38  }
 0x195   :  { %1519 = vset.pattern.permute.xlu1 %v1872_v9  ;;  %1527 = vset.pattern.permute.xlu0 %v1907_v46 }
 0x196   :  { %v1944_v53 = vpop.permute.xlu2 %601 }
 0x19c   :  { %1526 = vset.pattern.permute.xlu2 %v1917_v48 }
 0x19d   :  { %1105 = vperm.xlu1 %1519, %v1912_v47   ;;  %936 = vperm.xlu0 %1527, %v1899_v44  }
 0x1a4   :  { %738 = vperm.xlu2 %1526, %v692_v42  }
 0x1a5   :  { %1522 = vset.pattern.permute.xlu1 %v1917_v48  ;;  %1530 = vset.pattern.permute.xlu0 %v1917_v48 }
 0x1a6   :  { %v1948_v57 = vpop.permute.xlu2 %697 }
 0x1ac   :  { %840 = vperm.xlu2 %1526, %v1897_v43  }
 0x1ad   :  { %431 = vperm.xlu1 %1522, %v385_v40   ;;  %1044 = vperm.xlu0 %1530, %v998_v45  }
 0x1ae   :  { %v1967_v12 = vpop.permute.xlu1 %493 }
 0x1af   :  { %v1969_v13 = vpop.permute.xlu0 %390 }
 0x1b4   :  { %1529 = vset.pattern.permute.xlu2 %v1907_v46 }
 0x1b5   :  { %534 = vperm.xlu1 %1522, %v488_v39   ;;  %1535 = vset.pattern.permute.xlu0 %v1872_v9 }
 0x1b6   :  { %v1962_v1 = vpop.permute.xlu2 %805 }
 0x1bc   :  { %1038 = vperm.xlu2 %1529, %v998_v45  }
 0x1bd   :  { %1525 = vset.pattern.permute.xlu1 %v1907_v46  ;;  %506 = vperm.xlu0 %1535, %v1934_v49   ;;  %v323_v51 = vpop.f32.mrf.mxu2 }
 0x1be   :  { %v324_v52 = vadd.f32 %v1939_v50, %v323_v51 }
 0x1bf   :  { %v500_v28 = vpop.permute.xlu1 %499  ;;  %v397_v29 = vpop.permute.xlu0 %396 }
 0x1c0   :  { %v331_v54 = vand.u32 2147483647, %v324_v52  ;;  %v329_v14 = vmax.f32 %v324_v52, 0.0 }
 0x1c2   :  { %v333_v55 = vsub.f32 0.0, %v331_v54 }
 0x1c4   :  { %v335_v56 = vmul.f32 1.442695, %v333_v55  ;;  %1532 = vset.pattern.permute.xlu2 %v1917_v48 }
 0x1c5   :  { %732 = vperm.xlu1 %1525, %v692_v42   ;;  %1538 = vset.pattern.permute.xlu0 %v1869_v8 }
 0x1c6   :  { %1576 = vpow2.f32 %v335_v56  ;;  %v1971_v16 = vpop.permute.xlu2 %1003 }
 0x1cc   :  { %v1577_v60 = vpop.eup %1576  ;;  %1146 = vperm.xlu2 %1532, %v1912_v47  }
 0x1cd   :  { %v339_v62 = vadd.f32 1.0, %v1577_v60  ;;  %834 = vperm.xlu1 %1525, %v1897_v43   ;;  %614 = vperm.xlu0 %1538, %v1954_v59   ;;  %v342_v63 = vmul.f32 -0.5, %v1577_v60  ;;  %v345_v4 = vand.u32 2147483647, %v1577_v60 }
 0x1cf   :  { %1578 = vlog2.f32 %v339_v62  ;;  %v343_v2 = vadd.f32 1.0, %v342_v63  ;;  %vm346_vm1 = vcmp.lt.f32.partialorder %v345_v4, 0.0004427343  ;;  %v596_v51 = vpop.permute.xlu1 %595  ;;  %v2007_v52 = vpop.permute.xlu0 %901 }
 0x1d0   :  { %1580 = vpow2.f32 %v363_v61 }
 0x1d1   :  { %v344_v11 = vmul.f32 %v1577_v60, %v343_v2  ;;  %1582 = vpow2.f32 %v361_v3 }
 0x1d4   :  { %1533 = vset.pattern.permute.xlu2 %v1872_v9 }
 0x1d5   :  { %v1579_v5 = vpop.eup %1578  ;;  %1528 = vset.pattern.permute.xlu1 %v1917_v48  ;;  %1549 = vset.pattern.permute.xlu0 %v1907_v46 }
 0x1d6   :  { %v1581_v6 = vpop.eup %1580  ;;  %v341_v7 = vmul.f32 0.6931472, %v1579_v5  ;;  %v1112_v32 = vpop.permute.xlu2 %1111 }
 0x1d7   :  { %v1975_v18 = vsub.f32 0.0, %v1581_v6  ;;  %v1583_v23 = vpop.eup %1582 }
 0x1d8   :  { %v347_v15 = vsel %vm346_vm1, %v344_v11, %v341_v7  ;;  %v1992_v31 = vsub.f32 0.0, %v1583_v23 }
 0x1d9   :  { %v1973_v17 = vadd.f32 %v347_v15, %v329_v14 }
 0x1db   :  { %v1982_v20 = vmul.f32 %v1973_v17, %v1877_v24  ;;  %v367_v21 = vperm.slane %v1973_v17, 0  ;;  %v470_v22 = vperm.slane %v1973_v17, 1  ;;  %v572_v37 = vperm.slane %v1973_v17, 2 }
 0x1dc   :  { %403 = vperm.xlu2 %1533, %v1978_v19   ;;  %v674_v42 = vperm.slane %v1973_v17, 3  ;;  %v776_v56 = vperm.slane %v1973_v17, 4  ;;  %v878_v15 = vperm.slane %v1973_v17, 5 }
 0x1dd   :  { %v370_v25 = vmul.f32 %v367_v21, %v1975_v18  ;;  %v473_v26 = vmul.f32 %v470_v22, %v1975_v18  ;;  %942 = vperm.xlu1 %1528, %v1899_v44   ;;  %437 = vperm.xlu0 %1549, %v1978_v19   ;;  %v1126_v27 = vperm.slane %v1982_v20, 7  ;;  %v369_v38 = vmul.f32 %v367_v21, %v1992_v31 }
 0x1de   :  { %v472_v39 = vmul.f32 %v470_v22, %v1992_v31  ;;  %v411_v40 = vperm.slane %v1982_v20, 0  ;;  %v575_v44 = vmul.f32 %v572_v37, %v1975_v18  ;;  %v574_v55 = vmul.f32 %v572_v37, %v1992_v31 }
 0x1df   :  { %v375_v30 = vmul.f32 1.442695, %v370_v25  ;;  %v478_v34 = vmul.f32 1.442695, %v473_v26  ;;  %v1996_v36 = vmul.f32 %v1126_v27, %v1112_v32  ;;  %v373_v43 = vmul.f32 1.442695, %v369_v38  ;;  %v704_v26 = vpop.permute.xlu1 %703 }
 0x1e0   :  { %v476_v54 = vmul.f32 1.442695, %v472_v39  ;;  %v414_v60 = vmul.f32 %v411_v40, %v397_v29  ;;  %v580_v61 = vmul.f32 1.442695, %v575_v44  ;;  %v677_v62 = vmul.f32 %v674_v42, %v1975_v18  ;;  %v2026_v29 = vpop.permute.xlu0 %1009 }
 0x1e1   :  { %1584 = vpow2.f32 %v375_v30  ;;  %v514_v63 = vperm.slane %v1982_v20, 1  ;;  %v578_v3 = vmul.f32 1.442695, %v574_v55  ;;  %v676_v4 = vmul.f32 %v674_v42, %v1992_v31 }
 0x1e2   :  { %1586 = vpow2.f32 %v478_v34  ;;  %v682_v6 = vmul.f32 1.442695, %v677_v62  ;;  %v779_v7 = vmul.f32 %v776_v56, %v1975_v18  ;;  %v413_v21 = vmul.f32 %v411_v40, %v1969_v13 }
 0x1e3   :  { %1588 = vpow2.f32 %v373_v43  ;;  %v517_v14 = vmul.f32 %v514_v63, %v500_v28  ;;  %v616_v22 = vperm.slane %v1982_v20, 2  ;;  %v680_v30 = vmul.f32 1.442695, %v676_v4 }
 0x1e4   :  { %1534 = vset.pattern.permute.xlu2 %v1869_v8  ;;  %1590 = vpow2.f32 %v476_v54  ;;  %v778_v28 = vmul.f32 %v776_v56, %v1992_v31  ;;  %v881_v37 = vmul.f32 %v878_v15, %v1975_v18  ;;  %v980_v13 = vperm.slane %v1973_v17, 6 }
 0x1e5   :  { %1531 = vset.pattern.permute.xlu1 %v1907_v46  ;;  %1552 = vset.pattern.permute.xlu0 %v1917_v48  ;;  %1592 = vpow2.f32 %v580_v61  ;;  %v619_v39 = vmul.f32 %v616_v22, %v1944_v53  ;;  %v718_v40 = vperm.slane %v1982_v20, 3  ;;  %v516_v43 = vmul.f32 %v514_v63, %v1967_v12 }
 0x1e6   :  { %1594 = vpow2.f32 %v578_v3  ;;  %v2037_v44 = vpop.permute.xlu2 %528  ;;  %v880_v55 = vmul.f32 %v878_v15, %v1992_v31  ;;  %v886_v12 = vmul.f32 1.442695, %v881_v37  ;;  %v1082_v61 = vperm.slane %v1973_v17, 7 }
 0x1e7   :  { %v1585_v45 = vpop.eup %1584  ;;  %1596 = vpow2.f32 %v682_v6  ;;  %v618_v63 = vmul.f32 %v616_v22, %v596_v51  ;;  %v820_v4 = vperm.slane %v1982_v20, 4 }
 0x1e8   :  { %v382_v58 = vmul.f32 0.0, %v1585_v45  ;;  %v1587_v2 = vpop.eup %1586  ;;  %1598 = vpow2.f32 %v680_v30  ;;  %v782_v45 = vmul.f32 1.442695, %v778_v28  ;;  %v1085_v51 = vmul.f32 %v1082_v61, %v1975_v18 }
 0x1e9   :  { %v1589_v11 = vpop.eup %1588  ;;  %v2058_v28 = vperm.slane %v1888_v41, 5 }
 0x1ea   :  { %v2013_v0 = vadd.f32 %v414_v60, %v382_v58  ;;  %v381_v23 = vmul.f32 0.0, %v1589_v11  ;;  %v1591_v34 = vpop.eup %1590  ;;  %v983_v60 = vmul.f32 %v980_v13, %v1975_v18  ;;  %v884_v11 = vmul.f32 1.442695, %v880_v55 }
 0x1eb   :  { %v1593_v38 = vpop.eup %1592  ;;  %v1024_v55 = vperm.slane %v1982_v20, 6 }
 0x1ec   :  { %v485_v5 = vmul.f32 %v1587_v2, %v2013_v0  ;;  %409 = vperm.xlu2 %1534, %v1978_v19   ;;  %v2029_v32 = vadd.f32 %v413_v21, %v381_v23  ;;  %v1595_v53 = vpop.eup %1594  ;;  %v721_v2 = vmul.f32 %v718_v40, %v704_v26  ;;  %v988_v17 = vmul.f32 1.442695, %v983_v60 }
 0x1ed   :  { %1140 = vperm.xlu1 %1531, %v1912_v47   ;;  %648 = vperm.xlu0 %1552, %v1954_v59   ;;  %v784_v47 = vmul.f32 1.442695, %v779_v7  ;;  %v1597_v62 = vpop.eup %1596  ;;  %v720_v26 = vmul.f32 %v718_v40, %v1948_v57 }
 0x1ee   :  { %v2024_v25 = vadd.f32 %v517_v14, %v485_v5  ;;  %v484_v42 = vmul.f32 %v1591_v34, %v2029_v32  ;;  %v982_v14 = vmul.f32 %v980_v13, %v1992_v31  ;;  %v1599_v21 = vpop.eup %1598 }
 0x1ef   :  { %1600 = vpow2.f32 %v784_v47  ;;  %v800_v5 = vpop.permute.xlu1 %799  ;;  %v2050_v6 = vpop.permute.xlu0 %425  ;;  %v823_v47 = vmul.f32 %v820_v4, %v1962_v1  ;;  %v1090_v1 = vmul.f32 1.442695, %v1085_v51  ;;  %v1027_v51 = vmul.f32 %v1024_v55, %v2026_v29 }
 0x1f0   :  { %v587_v54 = vmul.f32 %v1593_v38, %v2024_v25  ;;  %v2041_v56 = vadd.f32 %v516_v43, %v484_v42  ;;  %1602 = vpow2.f32 %v782_v45  ;;  %v986_v37 = vmul.f32 1.442695, %v982_v14  ;;  %v631_v42 = vpop.permute.xlu2 %630 }
 0x1f1   :  { %1604 = vpow2.f32 %v886_v12  ;;  %v822_v45 = vmul.f32 %v820_v4, %v800_v5 }
 0x1f2   :  { %v623_v58 = vadd.f32 %v619_v39, %v587_v54  ;;  %v586_v3 = vmul.f32 %v1595_v53, %v2041_v56  ;;  %1606 = vpow2.f32 %v884_v11  ;;  %v922_v39 = vperm.slane %v1982_v20, 5 }
 0x1f3   :  { %1608 = vpow2.f32 %v988_v17  ;;  %v1084_v11 = vmul.f32 %v1082_v61, %v1992_v31  ;;  %v445_v20 = vmul.f32 %v2050_v6, %v2029_v32 }
 0x1f4   :  { %1537 = vset.pattern.permute.xlu2 %v1872_v9  ;;  %v689_v7 = vmul.f32 %v1597_v62, %v623_v58  ;;  %v622_v15 = vadd.f32 %v618_v63, %v586_v3  ;;  %1610 = vpow2.f32 %v986_v37 }
 0x1f5   :  { %1536 = vset.pattern.permute.xlu1 %v1869_v8  ;;  %1555 = vset.pattern.permute.xlu0 %v1907_v46  ;;  %v1601_v22 = vpop.eup %1600  ;;  %1612 = vpow2.f32 %v1090_v1  ;;  %v2094_v1 = vperm.slane %v1888_v41, 3 }
 0x1f6   :  { %v2053_v23 = vadd.f32 %v721_v2, %v689_v7  ;;  %v688_v30 = vmul.f32 %v1599_v21, %v622_v15  ;;  %v1603_v38 = vpop.eup %1602  ;;  %v650_v40 = vmul.f32 %v631_v42, %v622_v15  ;;  %v924_v7 = vmul.f32 %v922_v39, %v2007_v52 }
 0x1f7   :  { %v1605_v54 = vpop.eup %1604  ;;  %v1026_v42 = vmul.f32 %v1024_v55, %v1971_v16 }
 0x1f8   :  { %v791_v34 = vmul.f32 %v1601_v22, %v2053_v23  ;;  %v2062_v13 = vadd.f32 %v720_v26, %v688_v30  ;;  %v1607_v3 = vpop.eup %1606  ;;  %v654_v4 = vsel %vm262_vm9, %v650_v40, 0.0  ;;  %v1088_v26 = vmul.f32 1.442695, %v1084_v11 }
 0x1f9   :  { %v1609_v21 = vpop.eup %1608 }
 0x1fa   :  { %v2068_v57 = vadd.f32 %v823_v47, %v791_v34  ;;  %v790_v43 = vmul.f32 %v1603_v38, %v2062_v13  ;;  %v1611_v22 = vpop.eup %1610  ;;  %1614 = vpow2.f32 %v1088_v26 }
 0x1fb   :  { %v1613_v47 = vpop.eup %1612 }
 0x1fc   :  { %608 = vperm.xlu2 %1537, %v1954_v59   ;;  %v2072_v60 = vadd.f32 %v822_v45, %v790_v43  ;;  %v893_v62 = vmul.f32 %v1605_v54, %v2068_v57  ;;  %v2100_v45 = vperm.slane %v1888_v41, 7 }
 0x1fd   :  { %512 = vperm.xlu1 %1536, %v1934_v49   ;;  %948 = vperm.xlu0 %1555, %v2058_v28  }
 0x1fe   :  { %v892_v15 = vmul.f32 %v1607_v3, %v2072_v60  ;;  %v2090_v29 = vpop.permute.xlu2 %738 }
 0x1ff   :  { %v908_v53 = vpop.permute.xlu1 %907  ;;  %v637_v12 = vpop.permute.xlu0 %636 }
 0x200   :  { %v925_v63 = vmul.f32 %v922_v39, %v908_v53  ;;  %v651_v2 = vmul.f32 %v637_v12, %v623_v58  ;;  %v2084_v58 = vadd.f32 %v924_v7, %v892_v15  ;;  %v1615_v16 = vpop.eup %1614  ;;  %v2117_v7 = vperm.slane %v1888_v41, 4 }
 0x202   :  { %v2078_v5 = vadd.f32 %v925_v63, %v893_v62  ;;  %v655_v14 = vsel %vm262_vm9, %v651_v2, 0.0  ;;  %v994_v37 = vmul.f32 %v1611_v22, %v2084_v58 }
 0x203   :  { %v656_v17 = vadd.f32 %v655_v14, %v654_v4 }
 0x204   :  { %1540 = vset.pattern.permute.xlu2 %v1869_v8  ;;  %v995_v52 = vmul.f32 %v1609_v21, %v2078_v5  ;;  %v1030_v54 = vadd.f32 %v1026_v42, %v994_v37 }
 0x205   :  { %v657_v61 = vrot.slane %v656_v17, 4  ;;  %1539 = vset.pattern.permute.xlu1 %v1872_v9  ;;  %1558 = vset.pattern.permute.xlu0 %v1917_v48 }
 0x206   :  { %v1031_v30 = vadd.f32 %v1027_v51, %v995_v52  ;;  %v1096_v62 = vmul.f32 %v1615_v16, %v1030_v54  ;;  %v2110_v2 = vpop.permute.xlu2 %840 }
 0x207   :  { %v658_v34 = vadd.f32 %v657_v61, %v656_v17  ;;  %v449_v17 = vsel %vm262_vm9, %v445_v20, 0.0  ;;  %v326_v61 = vpop.f32.mrf.mxu2 }
 0x208   :  { %v1097_v38 = vmul.f32 %v1613_v47, %v1031_v30 }
 0x209   :  { %v659_v39 = vrot.slane %v658_v34, 2 }
 0x20a   :  { %v2097_v40 = vadd.f32 %v1996_v36, %v1097_v38 }
 0x20b   :  { %v660_v43 = vadd.f32 %v659_v39, %v658_v34 }
 0x20c   :  { %716 = vperm.xlu2 %1540, %v2094_v1  }
 0x20d   :  { %v661_v53 = vrot.slane %v660_v43, 1  ;;  %710 = vperm.xlu1 %1539, %v2094_v1   ;;  %1158 = vperm.xlu0 %1558, %v2100_v45  }
 0x20f   :  { %v662_v55 = vadd.f32 %v661_v53, %v660_v43  ;;  %v1106_v12 = vpop.permute.xlu1 %1105  ;;  %v2114_v3 = vpop.permute.xlu0 %936 }
 0x210   :  { %v1128_v36 = vmul.f32 %v1126_v27, %v1106_v12 }
 0x211   :  { %672 = vst.msk [vmem:[#allocation2 + $0x2] sm:$0x1] %vm467_vm2, %v662_v55 }
 0x212   :  { %v2108_v63 = vadd.f32 %v1128_v36, %v1096_v62 }
 0x214   :  { %1541 = vset.pattern.permute.xlu2 %v1872_v9 }
 0x215   :  { %1542 = vset.pattern.permute.xlu1 %v1869_v8 }
 0x216   :  { %v1039_v11 = vpop.permute.xlu2 %1038 }
 0x217   :  { %v1058_v27 = vmul.f32 %v1039_v11, %v1030_v54 }
 0x219   :  { %v1062_v51 = vsel %vm262_vm9, %v1058_v27, 0.0 }
 0x21c   :  { %812 = vperm.xlu2 %1541, %v2117_v7  }
 0x21d   :  { %818 = vperm.xlu1 %1542, %v2117_v7  }
 0x21f   :  { %v432_v4 = vpop.permute.xlu1 %431  ;;  %v1045_v14 = vpop.permute.xlu0 %1044 }
 0x220   :  { %v446_v15 = vmul.f32 %v432_v4, %v2013_v0  ;;  %v1059_v21 = vmul.f32 %v1045_v14, %v1031_v30  ;;  %v2131_v0 = vadd.f32 %v1939_v50, %v326_v61  ;;  %v548_v30 = vmul.f32 %v2037_v44, %v2041_v56 }
 0x222   :  { %v450_v52 = vsel %vm262_vm9, %v446_v15, 0.0  ;;  %v1063_v22 = vsel %vm262_vm9, %v1059_v21, 0.0  ;;  %v332_v54 = vand.u32 2147483647, %v2131_v0  ;;  %v552_v53 = vsel %vm262_vm9, %v548_v30, 0.0 }
 0x223   :  { %v451_v26 = vadd.f32 %v450_v52, %v449_v17  ;;  %v1064_v47 = vadd.f32 %v1063_v22, %v1062_v51  ;;  %v753_v21 = vmul.f32 %v2090_v29, %v2053_v23  ;;  %v855_v23 = vmul.f32 %v2110_v2, %v2068_v57 }
 0x224   :  { %1544 = vset.pattern.permute.xlu2 %v1869_v8  ;;  %v334_v62 = vsub.f32 0.0, %v332_v54 }
 0x225   :  { %v452_v32 = vrot.slane %v451_v26, 4  ;;  %v1065_v6 = vrot.slane %v1064_v47, 4  ;;  %1543 = vset.pattern.permute.xlu1 %v1872_v9  ;;  %v757_v22 = vsel %vm262_vm9, %v753_v21, 0.0 }
 0x226   :  { %v337_v4 = vmul.f32 1.442695, %v334_v62  ;;  %v1147_v57 = vpop.permute.xlu2 %1146 }
 0x227   :  { %v453_v34 = vadd.f32 %v452_v32, %v451_v26  ;;  %v1066_v37 = vadd.f32 %v1065_v6, %v1064_v47  ;;  %v535_v38 = vpop.permute.xlu1 %534  ;;  %v2152_v26 = vperm.slane %v1888_v41, 6 }
 0x228   :  { %v549_v39 = vmul.f32 %v535_v38, %v2024_v25  ;;  %1616 = vpow2.f32 %v337_v4  ;;  %v859_v38 = vsel %vm262_vm9, %v855_v23, 0.0 }
 0x229   :  { %v454_v42 = vrot.slane %v453_v34, 2  ;;  %v1067_v43 = vrot.slane %v1066_v37, 2 }
 0x22a   :  { %v553_v16 = vsel %vm262_vm9, %v549_v39, 0.0 }
 0x22b   :  { %v455_v55 = vadd.f32 %v454_v42, %v453_v34  ;;  %v1068_v12 = vadd.f32 %v1067_v43, %v1066_v37  ;;  %v554_v50 = vadd.f32 %v553_v16, %v552_v53 }
 0x22c   :  { %920 = vperm.xlu2 %1544, %v2058_v28  }
 0x22d   :  { %v456_v36 = vrot.slane %v455_v55, 1  ;;  %v1069_v44 = vrot.slane %v1068_v12, 1  ;;  %v555_v56 = vrot.slane %v554_v50, 4  ;;  %914 = vperm.xlu1 %1543, %v2058_v28  }
 0x22e   :  { %v1617_v32 = vpop.eup %1616 }
 0x22f   :  { %v457_v25 = vadd.f32 %v456_v36, %v455_v55  ;;  %v1070_v11 = vadd.f32 %v1069_v44, %v1068_v12  ;;  %v556_v20 = vadd.f32 %v555_v56, %v554_v50  ;;  %v351_v43 = vmul.f32 -0.5, %v1617_v32 }
 0x230   :  { %v354_v12 = vand.u32 2147483647, %v1617_v32 }
 0x231   :  { %468 = vst.msk [vmem:[#allocation2] sm:$0x1] %vm467_vm2, %v457_v25  ;;  %v557_v27 = vrot.slane %v556_v20, 2  ;;  %v352_v55 = vadd.f32 1.0, %v351_v43  ;;  %v330_v25 = vmax.f32 %v2131_v0, 0.0 }
 0x232   :  { %1080 = vst.msk [vmem:[#allocation2 + $0x6] sm:$0x1] %vm467_vm2, %v1070_v11  ;;  %vm355_vm3 = vcmp.lt.f32.partialorder %v354_v12, 0.0004427343 }
 0x233   :  { %v558_v14 = vadd.f32 %v557_v27, %v556_v20  ;;  %v353_v56 = vmul.f32 %v1617_v32, %v352_v55 }
 0x234   :  { %1545 = vset.pattern.permute.xlu2 %v1872_v9 }
 0x235   :  { %v559_v15 = vrot.slane %v558_v14, 1  ;;  %1546 = vset.pattern.permute.xlu1 %v1869_v8 }
 0x236   :  { %v2168_v62 = vpop.permute.xlu2 %403 }
 0x237   :  { %v560_v17 = vadd.f32 %v559_v15, %v558_v14  ;;  %v733_v51 = vpop.permute.xlu1 %732 }
 0x238   :  { %v752_v52 = vmul.f32 %v733_v51, %v2062_v13  ;;  %v348_v13 = vadd.f32 1.0, %v1617_v32 }
 0x239   :  { %570 = vst.msk [vmem:[#allocation2 + $0x1] sm:$0x1] %vm467_vm2, %v560_v17 }
 0x23a   :  { %v756_v61 = vsel %vm262_vm9, %v752_v52, 0.0  ;;  %1618 = vlog2.f32 %v348_v13  ;;  %v1161_v13 = vmul.f32 %v1147_v57, %v2097_v40 }
 0x23b   :  { %v758_v47 = vadd.f32 %v757_v22, %v756_v61 }
 0x23c   :  { %1016 = vperm.xlu2 %1545, %v2152_v26  }
 0x23d   :  { %v759_v6 = vrot.slane %v758_v47, 4  ;;  %1022 = vperm.xlu1 %1546, %v2152_v26  }
 0x23f   :  { %v760_v29 = vadd.f32 %v759_v6, %v758_v47  ;;  %v835_v30 = vpop.permute.xlu1 %834 }
 0x240   :  { %v854_v34 = vmul.f32 %v835_v30, %v2072_v60  ;;  %v1619_v60 = vpop.eup %1618 }
 0x241   :  { %v761_v37 = vrot.slane %v760_v29, 2  ;;  %v350_v44 = vmul.f32 0.6931472, %v1619_v60 }
 0x242   :  { %v858_v41 = vsel %vm262_vm9, %v854_v34, 0.0 }
 0x243   :  { %v762_v39 = vadd.f32 %v761_v37, %v760_v29  ;;  %v860_v42 = vadd.f32 %v859_v38, %v858_v41  ;;  %v356_v27 = vsel %vm355_vm3, %v353_v56, %v350_v44 }
 0x244   :  { %1548 = vset.pattern.permute.xlu2 %v1869_v8  ;;  %v2175_v21 = vadd.f32 %v356_v27, %v330_v25  ;;  %v1495_v27 = vmul.f32 -1.442695, %v1850_v33 }
 0x245   :  { %v763_v54 = vrot.slane %v762_v39, 1  ;;  %v861_v53 = vrot.slane %v860_v42, 4  ;;  %1547 = vset.pattern.permute.xlu1 %v1872_v9  ;;  %v956_v9 = vmul.f32 %v2114_v3, %v2084_v58 }
 0x246   :  { %v368_v58 = vperm.slane %v2175_v21, 0  ;;  %v410_v0 = vpop.permute.xlu2 %409  ;;  %v471_v32 = vperm.slane %v2175_v21, 1  ;;  %v675_v55 = vperm.slane %v2175_v21, 3 }
 0x247   :  { %v764_v2 = vadd.f32 %v763_v54, %v762_v39  ;;  %v862_v16 = vadd.f32 %v861_v53, %v860_v42  ;;  %v960_v14 = vsel %vm262_vm9, %v956_v9, 0.0  ;;  %v2193_v39 = vmul.f32 %v2175_v21, %v1881_v35 }
 0x248   :  { %v372_v51 = vmul.f32 %v368_v58, %v1975_v18  ;;  %v371_v22 = vmul.f32 %v368_v58, %v1992_v31  ;;  %v475_v37 = vmul.f32 %v471_v32, %v1975_v18  ;;  %v474_v38 = vmul.f32 %v471_v32, %v1992_v31 }
 0x249   :  { %774 = vst.msk [vmem:[#allocation2 + $0x3] sm:$0x1] %vm467_vm2, %v764_v2  ;;  %v863_v50 = vrot.slane %v862_v16, 2  ;;  %v573_v42 = vperm.slane %v2175_v21, 2  ;;  %v719_v2 = vperm.slane %v2193_v39, 3  ;;  %v412_v60 = vperm.slane %v2193_v39, 0 }
 0x24a   :  { %v379_v61 = vmul.f32 1.442695, %v372_v51  ;;  %v377_v23 = vmul.f32 1.442695, %v371_v22  ;;  %v482_v54 = vmul.f32 1.442695, %v475_v37 }
 0x24b   :  { %v864_v36 = vadd.f32 %v863_v50, %v862_v16  ;;  %v480_v53 = vmul.f32 1.442695, %v474_v38  ;;  %v577_v16 = vmul.f32 %v573_v42, %v1975_v18  ;;  %v416_v56 = vmul.f32 %v412_v60, %v410_v0 }
 0x24c   :  { %1124 = vperm.xlu2 %1548, %v2100_v45   ;;  %1620 = vpow2.f32 %v379_v61  ;;  %v617_v37 = vperm.slane %v2193_v39, 2 }
 0x24d   :  { %v865_v8 = vrot.slane %v864_v36, 1  ;;  %1118 = vperm.xlu1 %1547, %v2100_v45   ;;  %1622 = vpow2.f32 %v377_v23  ;;  %v584_v25 = vmul.f32 1.442695, %v577_v16 }
 0x24e   :  { %1624 = vpow2.f32 %v482_v54 }
 0x24f   :  { %v866_v11 = vadd.f32 %v865_v8, %v864_v36  ;;  %v943_v20 = vpop.permute.xlu1 %942  ;;  %1626 = vpow2.f32 %v480_v53  ;;  %v507_v8 = vpop.permute.xlu0 %506  ;;  %v821_v53 = vperm.slane %v2193_v39, 4 }
 0x250   :  { %v957_v4 = vmul.f32 %v943_v20, %v2078_v5  ;;  %v679_v20 = vmul.f32 %v675_v55, %v1975_v18  ;;  %1628 = vpow2.f32 %v584_v25 }
 0x251   :  { %876 = vst.msk [vmem:[#allocation2 + $0x4] sm:$0x1] %vm467_vm2, %v866_v11  ;;  %v777_v11 = vperm.slane %v2175_v21, 4  ;;  %1630 = vpow2.f32 %v1495_v27 }
 0x252   :  { %v961_v15 = vsel %vm262_vm9, %v957_v4, 0.0  ;;  %v1621_v57 = vpop.eup %1620  ;;  %v415_v4 = vmul.f32 %v412_v60, %v2168_v62  ;;  %v515_v62 = vperm.slane %v2193_v39, 1 }
 0x253   :  { %v962_v17 = vadd.f32 %v961_v15, %v960_v14  ;;  %v1623_v50 = vpop.eup %1622  ;;  %v1494_v15 = vmul.f32 -1.442695, %v1828_v10  ;;  %v780_v16 = vmul.f32 %v777_v11, %v1992_v31 }
 0x254   :  { %1551 = vset.pattern.permute.xlu2 %v1907_v46  ;;  %v383_v14 = vmul.f32 0.0, %v1623_v50  ;;  %v1625_v0 = vpop.eup %1624 }
 0x255   :  { %v963_v3 = vrot.slane %v962_v17, 4  ;;  %1550 = vset.pattern.permute.xlu1 %v1917_v48  ;;  %v1627_v22 = vpop.eup %1626  ;;  %1632 = vpow2.f32 %v1494_v15  ;;  %v786_v25 = vmul.f32 1.442695, %v780_v16 }
 0x256   :  { %v2186_v29 = vpop.permute.xlu2 %608  ;;  %v2221_v61 = vadd.f32 %v415_v4, %v383_v14 }
 0x257   :  { %v964_v5 = vadd.f32 %v963_v3, %v962_v17 }
 0x258   :  { %v486_v38 = vmul.f32 %v1627_v22, %v2221_v61 }
 0x259   :  { %v965_v52 = vrot.slane %v964_v5, 2 }
 0x25b   :  { %v966_v47 = vadd.f32 %v965_v52, %v964_v5  ;;  %v686_v5 = vmul.f32 1.442695, %v679_v20  ;;  %v781_v52 = vmul.f32 %v777_v11, %v1975_v18 }
 0x25c   :  { %540 = vperm.xlu2 %1551, %v1934_v49  }
 0x25d   :  { %v967_v6 = vrot.slane %v966_v47, 1  ;;  %443 = vperm.xlu1 %1550, %v1978_v19   ;;  %v1165_v19 = vsel %vm262_vm9, %v1161_v13, 0.0  ;;  %v615_v13 = vpop.permute.xlu0 %614 }
 0x25f   :  { %v968_v30 = vadd.f32 %v967_v6, %v966_v47  ;;  %v1141_v34 = vpop.permute.xlu1 %1140 }
 0x260   :  { %v1160_v41 = vmul.f32 %v1141_v34, %v2108_v63  ;;  %v788_v34 = vmul.f32 1.442695, %v781_v52 }
 0x261   :  { %978 = vst.msk [vmem:[#allocation2 + $0x5] sm:$0x1] %vm467_vm2, %v968_v30  ;;  %v678_v30 = vmul.f32 %v675_v55, %v1992_v31  ;;  %v879_v55 = vperm.slane %v2175_v21, 5 }
 0x262   :  { %v1164_v40 = vsel %vm262_vm9, %v1160_v41, 0.0 }
 0x263   :  { %v1166_v43 = vadd.f32 %v1165_v19, %v1164_v40  ;;  %v1629_v19 = vpop.eup %1628  ;;  %v882_v11 = vmul.f32 %v879_v55, %v1992_v31 }
 0x264   :  { %642 = vperm.xlu2 %1551, %v1954_v59   ;;  %v384_v59 = vmul.f32 0.0, %v1621_v57  ;;  %v1631_v40 = vpop.eup %1630 }
 0x265   :  { %v1167_v63 = vrot.slane %v1166_v43, 4  ;;  %546 = vperm.xlu1 %1550, %v1934_v49   ;;  %v576_v49 = vmul.f32 %v573_v42, %v1992_v31  ;;  %v518_v42 = vmul.f32 %v515_v62, %v507_v8  ;;  %v1633_v57 = vpop.eup %1632  ;;  %v888_v15 = vmul.f32 1.442695, %v882_v11 }
 0x266   :  { %v717_v12 = vpop.permute.xlu2 %716  ;;  %v2215_v58 = vadd.f32 %v416_v56, %v384_v59  ;;  %v2240_v56 = vadd.f32 1.0, %v1631_v40  ;;  %v2244_v8 = vadd.f32 1.0, %v1633_v57 }
 0x267   :  { %v1168_v36 = vadd.f32 %v1167_v63, %v1166_v43  ;;  %v2207_v44 = vmul.f32 %v719_v2, %v717_v12  ;;  %v582_v3 = vmul.f32 1.442695, %v576_v49  ;;  %v621_v43 = vmul.f32 %v617_v37, %v615_v13 }
 0x268   :  { %v487_v6 = vmul.f32 %v1625_v0, %v2215_v58  ;;  %v684_v63 = vmul.f32 1.442695, %v678_v30  ;;  %v2236_v12 = vadd.f32 %v518_v42, %v486_v38  ;;  %vm1221_vm4 = vweird.f32 %v2240_v56 }
 0x269   :  { %v1169_v9 = vrot.slane %v1168_v36, 2  ;;  %1634 = vpow2.f32 %v582_v3  ;;  %v1225_v16 = vand.u32 2147483647, %v2240_v56  ;;  %vm1206_vm8 = vweird.f32 %v2244_v8 }
 0x26a   :  { %1636 = vpow2.f32 %v686_v5 }
 0x26b   :  { %v1170_v17 = vadd.f32 %v1169_v9, %v1168_v36  ;;  %1638 = vpow2.f32 %v788_v34  ;;  %vm1226_vm11 = vcmp.eq.f32.partialorder %v1225_v16, 8.507059e+37 }
 0x26c   :  { %1554 = vset.pattern.permute.xlu2 %v1917_v48  ;;  %1640 = vpow2.f32 %v684_v63 }
 0x26d   :  { %v1171_v51 = vrot.slane %v1170_v17, 1  ;;  %1553 = vset.pattern.permute.xlu1 %v1907_v46  ;;  %1642 = vrcp.f32 %v2240_v56 }
 0x26e   :  { %1644 = vrcp.f32 %v2244_v8 }
 0x26f   :  { %v1172_v47 = vadd.f32 %v1171_v51, %v1170_v17  ;;  %v513_v32 = vpop.permute.xlu1 %512  ;;  %v1635_v60 = vpop.eup %1634  ;;  %1646 = vpow2.f32 %v786_v25 }
 0x270   :  { %v519_v23 = vmul.f32 %v515_v62, %v513_v32  ;;  %v1637_v59 = vpop.eup %1636  ;;  %v588_v20 = vmul.f32 %v1635_v60, %v2236_v12  ;;  %1648 = vpow2.f32 %v888_v15  ;;  %v923_v32 = vperm.slane %v2193_v39, 5 }
 0x271   :  { %1182 = vst.msk [vmem:[#allocation2 + $0x7] sm:$0x1] %vm467_vm2, %v1172_v47  ;;  %v1639_v4 = vpop.eup %1638 }
 0x272   :  { %v2228_v41 = vadd.f32 %v519_v23, %v487_v6  ;;  %v1641_v17 = vpop.eup %1640  ;;  %v883_v6 = vmul.f32 %v879_v55, %v1975_v18 }
 0x273   :  { %v1643_v51 = vpop.eup %1642 }
 0x274   :  { %v589_v54 = vmul.f32 %v1629_v19, %v2228_v41  ;;  %750 = vperm.xlu2 %1554, %v2094_v1   ;;  %v1645_v5 = vpop.eup %1644  ;;  %v1217_v62 = vmul.f32 %v1643_v51, %v2240_v56  ;;  %v890_v19 = vmul.f32 1.442695, %v883_v6  ;;  %vm1222_vm5 = vweird.f32 %v1643_v51 }
 0x275   :  { %744 = vperm.xlu1 %1553, %v2094_v1   ;;  %v620_v1 = vmul.f32 %v617_v37, %v2186_v29  ;;  %v1647_v22 = vpop.eup %1646  ;;  %vm1207_vm6 = vweird.f32 %v1645_v5  ;;  %vm2286_vm7 = vmor %vm1221_vm4, %vm1222_vm5 }
 0x276   :  { %v2238_v50 = vadd.f32 %v621_v43, %v589_v54  ;;  %v813_v36 = vpop.permute.xlu2 %812  ;;  %v1649_v30 = vpop.eup %1648  ;;  %v1218_v37 = vsub.f32 1.0, %v1217_v62  ;;  %1650 = vpow2.f32 %v890_v19  ;;  %v1227_v54 = vand.u32 2147483648, %v2240_v56  ;;  %vm2295_vm10 = vmor %vm1206_vm8, %vm1207_vm6 }
 0x277   :  { %v824_v49 = vmul.f32 %v821_v53, %v813_v36  ;;  %v2255_v14 = vadd.f32 %v620_v1, %v588_v20  ;;  %v1210_v1 = vand.u32 2147483647, %v2244_v8 }
 0x278   :  { %v691_v9 = vmul.f32 %v1637_v59, %v2238_v50  ;;  %v1219_v40 = vmul.f32 %v1643_v51, %v1218_v37  ;;  %v1228_v56 = vor.u32 1.1754944e-38, %v1227_v54 }
 0x279   :  { %vm1211_vm12 = vcmp.eq.f32.partialorder %v1210_v1, 8.507059e+37 }
 0x27a   :  { %v2251_v27 = vadd.f32 %v2207_v44, %v691_v9  ;;  %v690_v44 = vmul.f32 %v1641_v17, %v2255_v14  ;;  %v1220_v63 = vadd.f32 %v1643_v51, %v1219_v40  ;;  %v438_v40 = vpop.permute.xlu0 %437 }
 0x27c   :  { %852 = vperm.xlu2 %1554, %v2117_v7   ;;  %v793_v29 = vmul.f32 %v1639_v4, %v2251_v27  ;;  %v1083_v4 = vperm.slane %v2175_v21, 7 }
 0x27d   :  { %846 = vperm.xlu1 %1553, %v2117_v7   ;;  %v1202_v7 = vmul.f32 %v1645_v5, %v2244_v8 }
 0x27f   :  { %v711_v3 = vpop.permute.xlu1 %710  ;;  %v1203_v38 = vsub.f32 1.0, %v1202_v7 }
 0x280   :  { %v722_v0 = vmul.f32 %v719_v2, %v711_v3  ;;  %v981_v2 = vperm.slane %v2175_v21, 6 }
 0x281   :  { %v1204_v42 = vmul.f32 %v1645_v5, %v1203_v38 }
 0x282   :  { %v2263_v52 = vadd.f32 %v722_v0, %v690_v44  ;;  %v984_v20 = vmul.f32 %v981_v2, %v1992_v31 }
 0x283   :  { %v1205_v60 = vadd.f32 %v1645_v5, %v1204_v42 }
 0x284   :  { %v792_v47 = vmul.f32 %v1647_v22, %v2263_v52  ;;  %1557 = vset.pattern.permute.xlu2 %v1907_v46 }
 0x285   :  { %1556 = vset.pattern.permute.xlu1 %v1917_v48  ;;  %v985_v48 = vmul.f32 %v981_v2, %v1975_v18  ;;  %v1209_v11 = vsel %vm2295_vm10, %v1645_v5, %v1205_v60  ;;  %v990_v5 = vmul.f32 1.442695, %v984_v20 }
 0x286   :  { %v921_v23 = vpop.permute.xlu2 %920  ;;  %v2273_v13 = vadd.f32 %v824_v49, %v792_v47  ;;  %v1651_v49 = vpop.eup %1650 }
 0x287   :  { %v927_v34 = vmul.f32 %v923_v32, %v921_v23  ;;  %v992_v43 = vmul.f32 1.442695, %v985_v48 }
 0x288   :  { %v894_v46 = vmul.f32 %v1649_v30, %v2273_v13 }
 0x289   :  { %1652 = vpow2.f32 %v992_v43 }
 0x28a   :  { %1654 = vpow2.f32 %v990_v5 }
 0x28c   :  { %1050 = vperm.xlu2 %1557, %v2152_v26  }
 0x28d   :  { %954 = vperm.xlu1 %1556, %v2058_v28   ;;  %v1212_v28 = vand.u32 2147483648, %v2244_v8  ;;  %v1025_v8 = vperm.slane %v2193_v39, 6 }
 0x28f   :  { %v819_v57 = vpop.permute.xlu1 %818  ;;  %v1653_v3 = vpop.eup %1652 }
 0x290   :  { %v825_v55 = vmul.f32 %v821_v53, %v819_v57  ;;  %v1224_v53 = vsel %vm2286_vm7, %v1643_v51, %v1220_v63  ;;  %v1655_v6 = vpop.eup %1654  ;;  %v649_v57 = vpop.permute.xlu0 %648 }
 0x291   :  { %v653_v63 = vmul.f32 %v649_v57, %v2238_v50 }
 0x292   :  { %v2291_v59 = vadd.f32 %v825_v55, %v793_v29  ;;  %v1213_v29 = vor.u32 1.1754944e-38, %v1212_v28 }
 0x294   :  { %1152 = vperm.xlu2 %1557, %v2100_v45   ;;  %v895_v25 = vmul.f32 %v1651_v49, %v2291_v59  ;;  %v1229_v45 = vsel %vm1226_vm11, %v1228_v56, %v1224_v53  ;;  %v1214_v0 = vsel %vm1211_vm12, %v1213_v29, %v1209_v11 }
 0x295   :  { %1056 = vperm.xlu1 %1556, %v2152_v26   ;;  %v1086_v26 = vmul.f32 %v1083_v4, %v1992_v31  ;;  %v1232_v22 = vmul.f32 %v1229_v45, %v1850_v33  ;;  %v1231_v62 = vmul.f32 %v1214_v0, %v1828_v10  ;;  %v1087_v31 = vmul.f32 %v1083_v4, %v1975_v18 }
 0x296   :  { %v1017_v15 = vpop.permute.xlu2 %1016  ;;  %v2309_v17 = vadd.f32 %v927_v34, %v895_v25 }
 0x297   :  { %v1028_v44 = vmul.f32 %v1025_v8, %v1017_v15  ;;  %v1092_v21 = vmul.f32 1.442695, %v1086_v26  ;;  %v1094_v34 = vmul.f32 1.442695, %v1087_v31 }
 0x298   :  { %v997_v51 = vmul.f32 %v1653_v3, %v2309_v17 }
 0x299   :  { %1656 = vpow2.f32 %v1092_v21 }
 0x29a   :  { %1658 = vpow2.f32 %v1094_v34 }
 0x29c   :  { %1237 = vrot.lane.b32.xlu2 %v1232_v22, %s1702_s7 }
 0x29d   :  { %1235 = vrot.lane.b32.xlu1 %v1231_v62, %s1702_s7 }
 0x29f   :  { %v915_v47 = vpop.permute.xlu1 %914  ;;  %v1657_v10 = vpop.eup %1656 }
 0x2a0   :  { %v926_v7 = vmul.f32 %v923_v32, %v915_v47  ;;  %v1127_v32 = vperm.slane %v2193_v39, 7  ;;  %v664_v39 = vsel %vm262_vm9, %v653_v63, 0.0 }
 0x2a2   :  { %v2317_v2 = vadd.f32 %v926_v7, %v894_v46  ;;  %v1659_v46 = vpop.eup %1658 }
 0x2a4   :  { %v996_v23 = vmul.f32 %v1655_v6, %v2317_v2 }
 0x2a6   :  { %v2321_v33 = vadd.f32 %v1028_v44, %v996_v23  ;;  %v1125_v37 = vpop.permute.xlu2 %1124 }
 0x2a7   :  { %v1131_v42 = vmul.f32 %v1127_v32, %v1125_v37 }
 0x2a8   :  { %v1098_v30 = vmul.f32 %v1657_v10, %v2321_v33  ;;  %v949_v10 = vpop.permute.xlu0 %948 }
 0x2af   :  { %v1023_v38 = vpop.permute.xlu1 %1022 }
 0x2b0   :  { %v1029_v19 = vmul.f32 %v1025_v8, %v1023_v38  ;;  %v447_v8 = vmul.f32 %v438_v40, %v2221_v61 }
 0x2b2   :  { %v2325_v48 = vadd.f32 %v1029_v19, %v997_v51  ;;  %v458_v4 = vsel %vm262_vm9, %v447_v8, 0.0 }
 0x2b4   :  { %v1099_v43 = vmul.f32 %v1659_v46, %v2325_v48 }
 0x2b6   :  { %v541_v18 = vpop.permute.xlu2 %540  ;;  %v1135_v54 = vadd.f32 %v1131_v42, %v1099_v43  ;;  %v1159_v42 = vpop.permute.xlu0 %1158 }
 0x2b7   :  { %v550_v44 = vmul.f32 %v541_v18, %v2236_v12 }
 0x2b8   :  { %v1163_v18 = vmul.f32 %v1159_v42, %v1135_v54 }
 0x2b9   :  { %v561_v26 = vsel %vm262_vm9, %v550_v44, 0.0  ;;  %v83_v44 = vld [vmem:[%s2522_s9 + $0x10] sm:$0xff] }
 0x2ba   :  { %v1174_v54 = vsel %vm262_vm9, %v1163_v18, 0.0 }
 0x2be   :  { %v643_v16 = vpop.permute.xlu2 %642 }
 0x2bf   :  { %v1119_v55 = vpop.permute.xlu1 %1118  ;;  %v652_v60 = vmul.f32 %v643_v16, %v2255_v14 }
 0x2c0   :  { %v1130_v36 = vmul.f32 %v1127_v32, %v1119_v55 }
 0x2c1   :  { %v663_v28 = vsel %vm262_vm9, %v652_v60, 0.0 }
 0x2c2   :  { %v665_v49 = vadd.f32 %v664_v39, %v663_v28  ;;  %v1134_v1 = vadd.f32 %v1130_v36, %v1098_v30  ;;  %v88_v28 = vld [vmem:[%s2522_s9 + $0x38] sm:$0xff]  ;;  %v87_v39 = vld [vmem:[%s2522_s9 + $0x30] sm:$0xff] }
 0x2c3   :  { %1257 = vmatpush.msra.mxu3 %v88_v28 }
 0x2c4   :  { %v666_v56 = vrot.slane %v665_v49, 4 }
 0x2c5   :  { %1258 = vmatpush.msra.mxu3 %v87_v39  ;;  %v1674_v39 = vld [vmem:[%s2538_s23] sm:$0xff] }
 0x2c6   :  { %v667_v9 = vadd.f32 %v666_v56, %v665_v49 }
 0x2c8   :  { %v668_v53 = vrot.slane %v667_v9, 2 }
 0x2ca   :  { %v669_v25 = vadd.f32 %v668_v53, %v667_v9  ;;  %v86_v9 = vld [vmem:[%s2522_s9 + $0x28] sm:$0xff] }
 0x2cb   :  { %1259 = vmatpush.msra.mxu3 %v86_v9 }
 0x2cc   :  { %v670_v11 = vrot.slane %v669_v25, 1 }
 0x2ce   :  { %v671_v20 = vadd.f32 %v670_v11, %v669_v25  ;;  %v751_v3 = vpop.permute.xlu2 %750 }
 0x2cf   :  { %v444_v50 = vpop.permute.xlu1 %443 }
 0x2d0   :  { %673 = vst.msk [vmem:[#allocation2 + $0xa] sm:$0x1] %vm467_vm2, %v671_v20  ;;  %v448_v14 = vmul.f32 %v444_v50, %v2215_v58 }
 0x2d2   :  { %v459_v29 = vsel %vm262_vm9, %v448_v14, 0.0 }
 0x2d3   :  { %v460_v15 = vadd.f32 %v459_v29, %v458_v4  ;;  %v85_v29 = vld [vmem:[%s2522_s9 + $0x20] sm:$0xff] }
 0x2d4   :  { %1260 = vmatpush.msra.mxu3 %v85_v29 }
 0x2d5   :  { %v461_v45 = vrot.slane %v460_v15, 4 }
 0x2d6   :  { %v853_v7 = vpop.permute.xlu2 %852 }
 0x2d7   :  { %v462_v0 = vadd.f32 %v461_v45, %v460_v15  ;;  %v547_v51 = vpop.permute.xlu1 %546  ;;  %v857_v57 = vmul.f32 %v853_v7, %v2291_v59  ;;  %v84_v15 = vld [vmem:[%s2522_s9 + $0x18] sm:$0xff] }
 0x2d8   :  { %v551_v5 = vmul.f32 %v547_v51, %v2228_v41  ;;  %v755_v41 = vmul.f32 %v751_v3, %v2251_v27  ;;  %1261 = vmatpush.msra.mxu3 %v84_v15 }
 0x2d9   :  { %v463_v61 = vrot.slane %v462_v0, 2  ;;  %v868_v59 = vsel %vm262_vm9, %v857_v57, 0.0 }
 0x2da   :  { %v562_v22 = vsel %vm262_vm9, %v551_v5, 0.0  ;;  %v766_v32 = vsel %vm262_vm9, %v755_v41, 0.0  ;;  %v82_v5 = vld [vmem:[%s2522_s9 + $0x8] sm:$0xff]  ;;  %1262 = vmatpush.msra.mxu3 %v83_v44 }
 0x2db   :  { %v464_v62 = vadd.f32 %v463_v61, %v462_v0  ;;  %v563_v58 = vadd.f32 %v562_v22, %v561_v26  ;;  %v958_v61 = vmul.f32 %v949_v10, %v2317_v2 }
 0x2dc   :  { %1263 = vmatpush.msra.mxu3 %v82_v5 }
 0x2dd   :  { %v465_v21 = vrot.slane %v464_v62, 1  ;;  %v564_v47 = vrot.slane %v563_v58, 4 }
 0x2df   :  { %v466_v6 = vadd.f32 %v465_v21, %v464_v62  ;;  %v565_v23 = vadd.f32 %v564_v47, %v563_v58  ;;  %v81_v58 = vld [vmem:[%s2522_s9] sm:$0xff]  ;;  %v969_v47 = vsel %vm262_vm9, %v958_v61, 0.0 }
 0x2e0   :  { %1264 = vmatpush.msra.mxu3 %v81_v58  ;;  %v92_v58 = vld [vmem:[%s2525_s12 + $0x8] sm:$0xff] }
 0x2e1   :  { %469 = vst.msk [vmem:[#allocation2 + $0x8] sm:$0x1] %vm467_vm2, %v466_v6  ;;  %v566_v31 = vrot.slane %v565_v23, 2 }
 0x2e3   :  { %v567_v12 = vadd.f32 %v566_v31, %v565_v23 }
 0x2e5   :  { %v568_v30 = vrot.slane %v567_v12, 1 }
 0x2e6   :  { %v2343_v34 = vpop.permute.xlu2 %1050 }
 0x2e7   :  { %v569_v37 = vadd.f32 %v568_v30, %v567_v12  ;;  %v745_v38 = vpop.permute.xlu1 %744  ;;  %v1060_v23 = vmul.f32 %v2343_v34, %v2321_v33 }
 0x2e8   :  { %v754_v19 = vmul.f32 %v745_v38, %v2263_v52 }
 0x2e9   :  { %571 = vst.msk [vmem:[#allocation2 + $0x9] sm:$0x1] %vm467_vm2, %v569_v37  ;;  %v1071_v41 = vsel %vm262_vm9, %v1060_v23, 0.0  ;;  %v111_v23 = vld [vmem:[%s2527_s14 + $0x78] sm:$0xff] }
 0x2ea   :  { %v765_v46 = vsel %vm262_vm9, %v754_v19, 0.0  ;;  %1386 = vmatpush.msra.mxu0 %v111_v23 }
 0x2eb   :  { %v767_v40 = vadd.f32 %v766_v32, %v765_v46  ;;  %v1184_v32 = vld [vmem:[#allocation2] sm:$0xff] }
 0x2ed   :  { %v768_v43 = vrot.slane %v767_v40, 4 }
 0x2ee   :  { %v1153_v63 = vpop.permute.xlu2 %1152 }
 0x2ef   :  { %v769_v27 = vadd.f32 %v768_v43, %v767_v40  ;;  %v847_v16 = vpop.permute.xlu1 %846  ;;  %v1162_v55 = vmul.f32 %v1153_v63, %v1134_v1 }
 0x2f0   :  { %v856_v60 = vmul.f32 %v847_v16, %v2273_v13 }
 0x2f1   :  { %v770_v36 = vrot.slane %v769_v27, 2  ;;  %v1173_v52 = vsel %vm262_vm9, %v1162_v55, 0.0 }
 0x2f2   :  { %v867_v49 = vsel %vm262_vm9, %v856_v60, 0.0  ;;  %v1175_v1 = vadd.f32 %v1174_v54, %v1173_v52 }
 0x2f3   :  { %v771_v13 = vadd.f32 %v770_v36, %v769_v27  ;;  %v869_v56 = vadd.f32 %v868_v59, %v867_v49 }
 0x2f4   :  { %v1176_v53 = vrot.slane %v1175_v1, 4 }
 0x2f5   :  { %v772_v25 = vrot.slane %v771_v13, 1  ;;  %v870_v11 = vrot.slane %v869_v56, 4 }
 0x2f6   :  { %v1177_v8 = vadd.f32 %v1176_v53, %v1175_v1  ;;  %v1238_v36 = vpop.permute.xlu2 %1237 }
 0x2f7   :  { %v773_v20 = vadd.f32 %v772_v25, %v771_v13  ;;  %v871_v50 = vadd.f32 %v870_v11, %v869_v56  ;;  %v1703_v56 = vmov 32.0  }
 0x2f8   :  { %v1178_v14 = vrot.slane %v1177_v8, 2  ;;  %1660 = vrcp.f32 %v1703_v56  ;;  %v96_v56 = vld [vmem:[%s2527_s14] sm:$0xff] }
 0x2f9   :  { %775 = vst.msk [vmem:[#allocation2 + $0xb] sm:$0x1] %vm467_vm2, %v773_v20  ;;  %v872_v4 = vrot.slane %v871_v50, 2 }
 0x2fa   :  { %v1179_v3 = vadd.f32 %v1178_v14, %v1177_v8 }
 0x2fb   :  { %v873_v45 = vadd.f32 %v872_v4, %v871_v50 }
 0x2fc   :  { %v1180_v0 = vrot.slane %v1179_v3, 1 }
 0x2fd   :  { %v874_v51 = vrot.slane %v873_v45, 1 }
 0x2fe   :  { %v1181_v26 = vadd.f32 %v1180_v0, %v1179_v3  ;;  %v1661_v9 = vpop.eup %1660 }
 0x2ff   :  { %v875_v22 = vadd.f32 %v874_v51, %v873_v45  ;;  %v955_v62 = vpop.permute.xlu1 %954  ;;  %v1279_v53 = vmul.f32 32.0, %v1661_v9 }
 0x300   :  { %v959_v21 = vmul.f32 %v955_v62, %v2309_v17  ;;  %1183 = vst.msk [vmem:[#allocation2 + $0xf] sm:$0x1] %vm467_vm2, %v1181_v26  ;;  %v1561_v17 = vld [vmem:[%s2521_s8] ss:$0 sm:$0xff]  ;;  %v93_v62 = vld [vmem:[%s2525_s12 + $0x10] sm:$0xff] }
 0x301   :  { %877 = vst.msk [vmem:[#allocation2 + $0xc] sm:$0x1] %vm467_vm2, %v875_v22  ;;  %v1189_v46 = vmul.f32 %v1561_v17, %v1877_v24  ;;  %v1190_v55 = vmul.f32 %v1561_v17, %v1881_v35  ;;  %v1675_v35 = vld [vmem:[%s2538_s23 + $0x8] sm:$0xff]  ;;  %v1280_v25 = vsub.f32 1.0, %v1279_v53  ;;  %v94_v22 = vld [vmem:[%s2525_s12 + $0x18] sm:$0xff] }
 0x302   :  { %v970_v7 = vsel %vm262_vm9, %v959_v21, 0.0  ;;  %1354 = vmatpush.msrb.mxu2 %v94_v22 }
 0x303   :  { %v971_v2 = vadd.f32 %v970_v7, %v969_v47  ;;  %v1191_v34 = vadd.f32 %v1189_v46, %v1184_v32  ;;  %v1281_v11 = vmul.f32 %v1661_v9, %v1280_v25  ;;  %v91_v7 = vld [vmem:[%s2525_s12] sm:$0xff] }
 0x304   :  { %1355 = vmatpush.msrb.mxu2 %v93_v62 }
 0x305   :  { %v972_v6 = vrot.slane %v971_v2, 4  ;;  %v1282_v8 = vadd.f32 %v1661_v9, %v1281_v11 }
 0x306   :  { %1356 = vmatpush.msrb.mxu2 %v92_v58 }
 0x307   :  { %v973_v31 = vadd.f32 %v972_v6, %v971_v2  ;;  %v1057_v12 = vpop.permute.xlu1 %1056 }
 0x308   :  { %v1061_v10 = vmul.f32 %v1057_v12, %v2325_v48  ;;  %1357 = vmatpush.msrb.mxu2 %v91_v7  ;;  %v1565_v7 = vld [vmem:[%s2528_s15] ss:$0 sm:$0xff] }
 0x309   :  { %v974_v30 = vrot.slane %v973_v31, 2 }
 0x30a   :  { %v1072_v37 = vsel %vm262_vm9, %v1061_v10, 0.0  ;;  %v109_v10 = vld [vmem:[%s2527_s14 + $0x68] sm:$0xff] }
 0x30b   :  { %v975_v38 = vadd.f32 %v974_v30, %v973_v31  ;;  %v1073_v19 = vadd.f32 %v1072_v37, %v1071_v41  ;;  %v110_v31 = vld [vmem:[%s2527_s14 + $0x70] sm:$0xff]  ;;  %v108_v37 = vld [vmem:[%s2527_s14 + $0x60] sm:$0xff] }
 0x30c   :  { %1387 = vmatpush.msra.mxu0 %v110_v31 }
 0x30d   :  { %v976_v40 = vrot.slane %v975_v38, 1  ;;  %v1074_v33 = vrot.slane %v1073_v19, 4 }
 0x30e   :  { %1388 = vmatpush.msra.mxu0 %v109_v10 }
 0x30f   :  { %v977_v42 = vadd.f32 %v976_v40, %v975_v38  ;;  %v1075_v43 = vadd.f32 %v1074_v33, %v1073_v19  ;;  %v1236_v48 = vpop.permute.xlu1 %1235  ;;  %v1562_v38 = vld [vmem:[%s2523_s10] ss:$0 sm:$0xff] }
 0x310   :  { %v1241_v18 = vmul.f32 %v1236_v48, %v1191_v34  ;;  %v1563_v40 = vld [vmem:[%s2524_s11] ss:$0 sm:$0xff]  ;;  %1389 = vmatpush.msra.mxu0 %v108_v37 }
 0x311   :  { %979 = vst.msk [vmem:[#allocation2 + $0xd] sm:$0x1] %vm467_vm2, %v977_v42  ;;  %v1076_v57 = vrot.slane %v1075_v43, 2 }
 0x312   :  { %1496 = vmatmul.msk.f32.vlgmr.msra.gmra.mxu3 %vm262_vm9, %v1241_v18 }
 0x313   :  { %v1077_v63 = vadd.f32 %v1076_v57, %v1075_v43 }
 0x315   :  { %v1078_v27 = vrot.slane %v1077_v63, 1 }
 0x317   :  { %v1079_v16 = vadd.f32 %v1078_v27, %v1077_v63 }
 0x319   :  { %1081 = vst.msk [vmem:[#allocation2 + $0xe] sm:$0x1] %vm467_vm2, %v1079_v16 }
 0x320   :  { %v1185_v24 = vld [vmem:[#allocation2 + $0x8] sm:$0xff] }
 0x321   :  { %v1192_v60 = vadd.f32 %v1190_v55, %v1185_v24 }
 0x323   :  { %v1242_v52 = vmul.f32 %v1238_v36, %v1192_v60  ;;  %v107_v60 = vld [vmem:[%s2527_s14 + $0x58] sm:$0xff]  ;;  %v106_v36 = vld [vmem:[%s2527_s14 + $0x50] sm:$0xff] }
 0x324   :  { %1390 = vmatpush.msra.mxu0 %v107_v60 }
 0x325   :  { %1497 = vmatmul.msk.f32.gmra.mxu3 %vm262_vm9, %v1242_v52  ;;  %vm1283_vm9 = vweird.f32 %v1661_v9  ;;  %v105_v52 = vld [vmem:[%s2527_s14 + $0x48] sm:$0xff] }
 0x326   :  { %v2408_v20 = vsel %vm1283_vm9, %v1661_v9, %v1282_v8  ;;  %1391 = vmatpush.msra.mxu0 %v106_v36  ;;  %v1564_v9 = vld [vmem:[%s2526_s13] ss:$0 sm:$0xff] }
 0x328   :  { %1392 = vmatpush.msra.mxu0 %v105_v52  ;;  %v1566_v52 = vld [vmem:[%s2529_s16] ss:$0 sm:$0xff]  ;;  %s1704_s16 = smov [#allocation3]  }
 0x329   :  { %s1471_s2 = sshll.u32 %s1704_s16, 4  ;;  %s1472_s2 = int_to_ptr.vmem [resolvable:$true] %s1471_s2 }
 0x395   :  { %v1266_v28 = vpop.f32.mrf.mxu3 }
 0x396   :  { %v1267_v54 = vadd.f32 %v1674_v39, %v1266_v28  ;;  %v104_v28 = vld [vmem:[%s2527_s14 + $0x40] sm:$0xff]  ;;  %v103_v39 = vld [vmem:[%s2527_s14 + $0x38] sm:$0xff] }
 0x397   :  { %1393 = vmatpush.msra.mxu0 %v104_v28 }
 0x398   :  { %v1272_v59 = vsel %vm115_vm0, %v1267_v54, 0.0 }
 0x399   :  { %1273 = vadd.xlane.f32.xlu1 %v1272_v59  ;;  %1394 = vmatpush.msra.mxu0 %v103_v39  ;;  %v101_v59 = vld [vmem:[%s2527_s14 + $0x28] sm:$0xff] }
 0x3a8   :  { %v1269_v49 = vpop.f32.mrf.mxu3 }
 0x3a9   :  { %v1270_v1 = vadd.f32 %v1675_v35, %v1269_v49  ;;  %v100_v49 = vld [vmem:[%s2527_s14 + $0x20] sm:$0xff]  ;;  %v99_v35 = vld [vmem:[%s2527_s14 + $0x18] sm:$0xff] }
 0x3ab   :  { %v1275_v13 = vsel %vm115_vm0, %v1270_v1, 0.0 }
 0x3ac   :  { %1276 = vadd.xlane.f32.xlu2 %v1275_v13  ;;  %v97_v13 = vld [vmem:[%s2527_s14 + $0x8] sm:$0xff] }
 0x40c   :  { %v1274_v50 = vpop.xlane.xlu1 %1273 }
 0x40d   :  { %v1285_v14 = vmul.f32 %v2408_v20, %v1274_v50 }
 0x40f   :  { %v1287_v4 = vsub.f32 %v1267_v54, %v1285_v14  ;;  %v102_v54 = vld [vmem:[%s2527_s14 + $0x30] sm:$0xff] }
 0x410   :  { %1395 = vmatpush.msra.mxu0 %v102_v54 }
 0x411   :  { %v1289_v29 = vmul.f32 %v1287_v4, %v1287_v4 }
 0x412   :  { %1396 = vmatpush.msra.mxu0 %v101_v59  ;;  %v1567_v59 = vld [vmem:[%s2530_s17] ss:$0 sm:$0xff] }
 0x413   :  { %v1291_v15 = vsel %vm115_vm0, %v1289_v29, 0.0 }
 0x414   :  { %1292 = vadd.xlane.f32.xlu0 %v1291_v15  ;;  %1397 = vmatpush.msra.mxu0 %v100_v49 }
 0x416   :  { %1398 = vmatpush.msra.mxu0 %v99_v35 }
 0x41f   :  { %v1277_v3 = vpop.xlane.xlu2 %1276 }
 0x420   :  { %v1286_v45 = vmul.f32 %v2408_v20, %v1277_v3 }
 0x422   :  { %v1288_v44 = vsub.f32 %v1270_v1, %v1286_v45  ;;  %v98_v1 = vld [vmem:[%s2527_s14 + $0x10] sm:$0xff] }
 0x423   :  { %1399 = vmatpush.msra.mxu0 %v98_v1 }
 0x424   :  { %v1290_v0 = vmul.f32 %v1288_v44, %v1288_v44 }
 0x425   :  { %1400 = vmatpush.msra.mxu0 %v97_v13 }
 0x426   :  { %v1294_v51 = vsel %vm115_vm0, %v1290_v0, 0.0 }
 0x427   :  { %1295 = vadd.xlane.f32.xlu2 %v1294_v51  ;;  %1401 = vmatpush.msra.mxu0 %v96_v56 }
 0x487   :  { %v1293_v5 = vpop.xlane.xlu0 %1292 }
 0x488   :  { %v1297_v61 = vmul.f32 %v1293_v5, %v2408_v20 }
 0x48a   :  { %v1299_v26 = vadd.f32 1e-12, %v1297_v61 }
 0x48c   :  { %1662 = vrsqrt.f32 %v1299_v26  ;;  %vm1307_vm14 = vweird.f32 %v1299_v26 }
 0x492   :  { %v1663_v21 = vpop.eup %1662 }
 0x493   :  { %v1302_v47 = vmul.f32 %v1663_v21, %v1299_v26  ;;  %vm1308_vm13 = vweird.f32 %v1663_v21 }
 0x494   :  { %vm1309_vm15 = vmor %vm1307_vm14, %vm1308_vm13 }
 0x495   :  { %v1303_v2 = vmul.f32 %v1663_v21, %v1302_v47 }
 0x497   :  { %v1304_v6 = vmul.f32 0.5, %v1303_v2 }
 0x499   :  { %v1305_v12 = vsub.f32 1.5, %v1304_v6 }
 0x49a   :  { %v1296_v17 = vpop.xlane.xlu2 %1295 }
 0x49b   :  { %v1306_v30 = vmul.f32 %v1663_v21, %v1305_v12  ;;  %v1298_v41 = vmul.f32 %v1296_v17, %v2408_v20 }
 0x49d   :  { %v1310_v19 = vsel %vm1309_vm15, %v1663_v21, %v1306_v30  ;;  %v1300_v32 = vadd.f32 1e-12, %v1298_v41 }
 0x49e   :  { %v1321_v46 = vmul.f32 %v1310_v19, %v1287_v4 }
 0x49f   :  { %1664 = vrsqrt.f32 %v1300_v32  ;;  %vm1317_vm2 = vweird.f32 %v1300_v32 }
 0x4a0   :  { %v1326_v33 = vmul.f32 %v1562_v38, %v1321_v46 }
 0x4a2   :  { %v2446_v34 = vadd.f32 %v1563_v40, %v1326_v33 }
 0x4a4   :  { %1498 = vmatmul.msk.f32.vlgmr.msrb.gmra.mxu2 %vm115_vm0, %v2446_v34 }
 0x4a5   :  { %v1665_v42 = vpop.eup %1664 }
 0x4a6   :  { %v1312_v43 = vmul.f32 %v1665_v42, %v1300_v32  ;;  %vm1318_vm1 = vweird.f32 %v1665_v42 }
 0x4a7   :  { %vm1319_vm3 = vmor %vm1317_vm2, %vm1318_vm1 }
 0x4a8   :  { %v1313_v48 = vmul.f32 %v1665_v42, %v1312_v43 }
 0x4aa   :  { %v1314_v18 = vmul.f32 0.5, %v1313_v48 }
 0x4ac   :  { %v1315_v57 = vsub.f32 1.5, %v1314_v18 }
 0x4ae   :  { %v1316_v63 = vmul.f32 %v1665_v42, %v1315_v57 }
 0x4b0   :  { %v1320_v27 = vsel %vm1319_vm3, %v1665_v42, %v1316_v63 }
 0x4b1   :  { %v1322_v16 = vmul.f32 %v1320_v27, %v1288_v44 }
 0x4b3   :  { %v1327_v55 = vmul.f32 %v1562_v38, %v1322_v16 }
 0x4b5   :  { %v1332_v24 = vadd.f32 %v1563_v40, %v1327_v55 }
 0x4b7   :  { %1499 = vmatmul.msk.f32.gmra.mxu2 %vm115_vm0, %v1332_v24 }
 0x527   :  { %v1359_v53 = vpop.f32.mrf.mxu2 }
 0x528   :  { %v1360_v25 = vadd.f32 %v1564_v9, %v1359_v53 }
 0x52a   :  { %v1367_v11 = vmul.f32 0.044715, %v1360_v25  ;;  %v1365_v45 = vmul.f32 0.5, %v1360_v25 }
 0x52c   :  { %v1369_v8 = vmul.f32 %v1367_v11, %v1360_v25 }
 0x52e   :  { %v1371_v50 = vmul.f32 %v1369_v8, %v1360_v25 }
 0x530   :  { %v1373_v14 = vadd.f32 %v1371_v50, %v1360_v25 }
 0x532   :  { %v1375_v4 = vmul.f32 0.7978846, %v1373_v14 }
 0x534   :  { %1666 = vtanh.f32 %v1375_v4 }
 0x53a   :  { %v1667_v29 = vpop.eup %1666  ;;  %v1362_v15 = vpop.f32.mrf.mxu2 }
 0x53b   :  { %v1363_v3 = vadd.f32 %v1564_v9, %v1362_v15  ;;  %v1379_v44 = vadd.f32 1.0, %v1667_v29 }
 0x53d   :  { %v1381_v0 = vmul.f32 %v1379_v44, %v1365_v45  ;;  %v1368_v51 = vmul.f32 0.044715, %v1363_v3  ;;  %v1366_v58 = vmul.f32 0.5, %v1363_v3 }
 0x53f   :  { %1402 = vmatmul.f32.vlgmr.msra.gmra.mxu0 %v1381_v0  ;;  %v1370_v5 = vmul.f32 %v1368_v51, %v1363_v3 }
 0x541   :  { %v1372_v61 = vmul.f32 %v1370_v5, %v1363_v3 }
 0x543   :  { %v1374_v26 = vadd.f32 %v1372_v61, %v1363_v3 }
 0x545   :  { %v1376_v22 = vmul.f32 0.7978846, %v1374_v26 }
 0x547   :  { %1668 = vtanh.f32 %v1376_v22 }
 0x54d   :  { %v1669_v62 = vpop.eup %1668 }
 0x54e   :  { %v1380_v21 = vadd.f32 1.0, %v1669_v62 }
 0x550   :  { %v1382_v47 = vmul.f32 %v1380_v21, %v1366_v58 }
 0x552   :  { %1405 = vmatmul.f32.gmra.mxu0 %v1382_v47 }
 0x5bc   :  { %v1403_v2 = vpop.f32.mrf.mxu0 }
 0x5bd   :  { %v1404_v6 = vadd.f32 %v1565_v7, %v1403_v2 }
 0x5bf   :  { %v1409_v23 = vadd.f32 %v1404_v6, %v2446_v34 }
 0x5c1   :  { %v1411_v31 = vsel %vm115_vm0, %v1409_v23, 0.0 }
 0x5c2   :  { %1412 = vadd.xlane.f32.xlu1 %v1411_v31 }
 0x5cf   :  { %v1406_v12 = vpop.f32.mrf.mxu0 }
 0x5d0   :  { %v1407_v10 = vadd.f32 %v1565_v7, %v1406_v12 }
 0x5d2   :  { %v1410_v17 = vadd.f32 %v1407_v10, %v1332_v24 }
 0x5d4   :  { %v1414_v30 = vsel %vm115_vm0, %v1410_v17, 0.0 }
 0x5d5   :  { %1415 = vadd.xlane.f32.xlu2 %v1414_v30 }
 0x635   :  { %v1413_v41 = vpop.xlane.xlu1 %1412 }
 0x636   :  { %v1417_v37 = vmul.f32 %v1413_v41, %v2408_v20 }
 0x638   :  { %v1419_v38 = vsub.f32 %v1409_v23, %v1417_v37 }
 0x63a   :  { %v1421_v19 = vmul.f32 %v1419_v38, %v1419_v38 }
 0x63c   :  { %v1423_v32 = vsel %vm115_vm0, %v1421_v19, 0.0 }
 0x63d   :  { %1424 = vadd.xlane.f32.xlu0 %v1423_v32 }
 0x648   :  { %v1416_v46 = vpop.xlane.xlu2 %1415 }
 0x649   :  { %v1418_v40 = vmul.f32 %v1416_v46, %v2408_v20 }
 0x64b   :  { %v1420_v33 = vsub.f32 %v1410_v17, %v1418_v40 }
 0x64d   :  { %v1422_v34 = vmul.f32 %v1420_v33, %v1420_v33 }
 0x64f   :  { %v1426_v42 = vsel %vm115_vm0, %v1422_v34, 0.0 }
 0x650   :  { %1427 = vadd.xlane.f32.xlu1 %v1426_v42 }
 0x6b0   :  { %v1425_v43 = vpop.xlane.xlu0 %1424 }
 0x6b1   :  { %v1429_v48 = vmul.f32 %v1425_v43, %v2408_v20 }
 0x6b3   :  { %v1431_v18 = vadd.f32 1e-12, %v1429_v48 }
 0x6b5   :  { %1670 = vrsqrt.f32 %v1431_v18  ;;  %vm1439_vm5 = vweird.f32 %v1431_v18 }
 0x6bb   :  { %v1671_v57 = vpop.eup %1670 }
 0x6bc   :  { %v1434_v63 = vmul.f32 %v1671_v57, %v1431_v18  ;;  %vm1440_vm4 = vweird.f32 %v1671_v57 }
 0x6bd   :  { %vm1441_vm6 = vmor %vm1439_vm5, %vm1440_vm4 }
 0x6be   :  { %v1435_v27 = vmul.f32 %v1671_v57, %v1434_v63 }
 0x6c0   :  { %v1436_v16 = vmul.f32 0.5, %v1435_v27 }
 0x6c2   :  { %v1437_v55 = vsub.f32 1.5, %v1436_v16 }
 0x6c3   :  { %v1428_v24 = vpop.xlane.xlu1 %1427 }
 0x6c4   :  { %v1438_v60 = vmul.f32 %v1671_v57, %v1437_v55  ;;  %v1430_v36 = vmul.f32 %v1428_v24, %v2408_v20 }
 0x6c6   :  { %v1442_v28 = vsel %vm1441_vm6, %v1671_v57, %v1438_v60  ;;  %v1432_v39 = vadd.f32 1e-12, %v1430_v36 }
 0x6c7   :  { %v1453_v54 = vmul.f32 %v1442_v28, %v1419_v38 }
 0x6c8   :  { %1672 = vrsqrt.f32 %v1432_v39  ;;  %vm1449_vm8 = vweird.f32 %v1432_v39 }
 0x6c9   :  { %v1458_v49 = vmul.f32 %v1566_v52, %v1453_v54 }
 0x6cb   :  { %v1463_v35 = vadd.f32 %v1567_v59, %v1458_v49 }
 0x6cd   :  { %1465 = vst.msk [vmem:[#allocation3] sm:$0xff] %vm115_vm0, %v1463_v35 }
 0x6ce   :  { %v1673_v1 = vpop.eup %1672 }
 0x6cf   :  { %v1444_v13 = vmul.f32 %v1673_v1, %v1432_v39  ;;  %vm1450_vm7 = vweird.f32 %v1673_v1 }
 0x6d0   :  { %vm1451_vm10 = vmor %vm1449_vm8, %vm1450_vm7 }
 0x6d1   :  { %v1445_v20 = vmul.f32 %v1673_v1, %v1444_v13 }
 0x6d3   :  { %v1446_v56 = vmul.f32 0.5, %v1445_v20 }
 0x6d5   :  { %v1447_v9 = vsub.f32 1.5, %v1446_v56 }
 0x6d7   :  { %v1448_v53 = vmul.f32 %v1673_v1, %v1447_v9 }
 0x6d9   :  { %v1452_v25 = vsel %vm1451_vm10, %v1673_v1, %v1448_v53 }
 0x6da   :  { %v1454_v11 = vmul.f32 %v1452_v25, %v1420_v33 }
 0x6dc   :  { %v1459_v8 = vmul.f32 %v1566_v52, %v1454_v11 }
 0x6de   :  { %v1464_v50 = vadd.f32 %v1567_v59, %v1459_v8 }
 0x6e0   :  { %1466 = vst.msk [vmem:[#allocation3 + $0x8] sm:$0xff] %vm115_vm0, %v1464_v50 }
 0x6e1   :  { %1479 = dma.vmem_to_hbm [thread:$0]  %s1472_s2, 256, %s1474_s24, [#allocation4], %s1705_s25, %s1705_s25, %s1706_s3  }
 0x6e2   :  { %1700 = dma.done.wait [#allocation4], 256  }
 0x6e3   :  { %1701 = vsyncadd [#allocation4], 4294967040 }
 0x6e4   :  { %1484 = vsyncpa [#allocation4], 1 }

</bundles_post_ra>
